<compile_context>
chip_gen: v7x
topology: tpu7x:2x2x1
jax: 0.10.0
libtpu: 0.0.40
codegen_flags: <defaults>
</compile_context>

<pallas_src>
import jax
import jax.numpy as jnp
from jax import lax
from jax.experimental import pallas as pl
from jax.experimental.pallas import tpu as pltpu

EPS = 1e-5


def _round_up(a, m):
    return (a + m - 1) // m * m


def conv3d_bn_relu(x_ncdhw, w_oidhw, gamma, beta):
    """x: (N, Cin, D, H, W) f32, w: (Cout, Cin, 3, 3, 3) f32 -> (N, Cout, D, H, W) f32."""
    N, Cin, D, H, W = x_ncdhw.shape
    Cout = w_oidhw.shape[0]
    Dp, Hp, Wp = D + 2, H + 2, W + 2
    Sp = Dp * Hp * Wp                      # padded spatial volume, flattened
    K = 27 * Cin                           # im2col contraction size

    # Anchors computed on the padded-flat grid.  Every valid output position has
    # anchor p = d*Hp*Wp + h*Wp + w < D*Hp*Wp.
    P = _round_up(D * Hp * Wp, 128)
    max_off = 2 * Hp * Wp + 2 * Wp + 2     # largest 3x3x3 tap offset
    Lin = _round_up(P + max_off, 128)      # flat input length (zero-padded tail)

    # ---------------- wrapper-side layout plumbing (pure data movement) ----------------
    xp = jnp.pad(x_ncdhw, ((0, 0), (0, 0), (1, 1), (1, 1), (1, 1)))
    xf = xp.reshape(N, Cin, Sp)
    xf = jnp.pad(xf, ((0, 0), (0, 0), (0, Lin - Sp)))

    # weight -> (Cout, 27*Cin); contraction index = (kd*9 + kh*3 + kw)*Cin + c
    w2 = jnp.transpose(w_oidhw, (0, 2, 3, 4, 1)).reshape(Cout, K).astype(jnp.float32)

    # validity mask over the P computed anchors (padding rows/cols are invalid)
    p_idx = jnp.arange(P, dtype=jnp.int32)
    d_i = p_idx // (Hp * Wp)
    r_i = p_idx % (Hp * Wp)
    h_i = r_i // Wp
    w_i = r_i % Wp
    mask = ((d_i < D) & (h_i < H) & (w_i < W)).astype(jnp.float32).reshape(1, P)

    tap_offsets = tuple(kd * Hp * Wp + kh * Wp + kw
                        for kd in range(3) for kh in range(3) for kw in range(3))

    # ---------------- kernel 1: conv (single matmul) + per-batch BN partials ----------------
    def conv_stats_kernel(x_ref, w_ref, mask_ref, y_ref, ssum_ref, ssq_ref, col_ref):
        # Build the im2col buffer once: each tap is a pure lane-shift of the flat slab.
        for t, off in enumerate(tap_offsets):
            col_ref[t * Cin:(t + 1) * Cin, :] = x_ref[0, :, off:off + P]

        # One lane-dense MXU contraction: (Cout, 27*Cin) @ (27*Cin, P) -> (Cout, P)
        acc = jnp.dot(w_ref[...], col_ref[...], preferred_element_type=jnp.float32)
        y_ref[0] = acc

        # Per-batch-element BN partial statistics over valid positions only.
        m = mask_ref[...]                                        # (1, P)
        am = acc * m
        ssum_ref[0] = jnp.sum(am, axis=1, keepdims=True)         # (Cout, 1)
        ssq_ref[0] = jnp.sum(am * acc, axis=1, keepdims=True)    # (Cout, 1)

    y, psum, psq = pl.pallas_call(
        conv_stats_kernel,
        out_shape=(
            jax.ShapeDtypeStruct((N, Cout, P), jnp.float32),
            jax.ShapeDtypeStruct((N, Cout, 1), jnp.float32),
            jax.ShapeDtypeStruct((N, Cout, 1), jnp.float32),
        ),
        grid_spec=pltpu.PrefetchScalarGridSpec(
            num_scalar_prefetch=0,
            grid=(N,),
            in_specs=[
                pl.BlockSpec((1, Cin, Lin), lambda n: (n, 0, 0)),
                pl.BlockSpec((Cout, K), lambda n: (0, 0)),
                pl.BlockSpec((1, P), lambda n: (0, 0)),
            ],
            out_specs=[
                pl.BlockSpec((1, Cout, P), lambda n: (n, 0, 0)),
                pl.BlockSpec((1, Cout, 1), lambda n: (n, 0, 0)),
                pl.BlockSpec((1, Cout, 1), lambda n: (n, 0, 0)),
            ],
            scratch_shapes=[pltpu.VMEM((K, P), jnp.float32)],
        ),
        compiler_params=pltpu.CompilerParams(
            dimension_semantics=("parallel",),        # per-batch partial stats -> no accumulator
            vmem_limit_bytes=32 * 1024 * 1024,
        ),
    )(xf, w2, mask)

    # ---------------- BN scale/shift (tiny scalar glue; training-mode batch stats) ----------------
    count = N * D * H * W
    tot = jnp.sum(psum[:, :, 0], axis=0)              # (Cout,)
    tot_sq = jnp.sum(psq[:, :, 0], axis=0)            # (Cout,)
    mean = tot / count
    var = tot_sq / count - mean * mean                # biased variance (E[x^2]-E[x]^2; fine at this size)
    inv = gamma * lax.rsqrt(var + EPS)
    scale_rows = jnp.tile(inv, (N,)).reshape(N * Cout, 1)
    shift_rows = jnp.tile(beta - mean * inv, (N,)).reshape(N * Cout, 1)

    # ---------------- kernel 2: lane-dense BN + ReLU over the (N*Cout, P) slab ----------------
    def bn_relu_kernel(y_ref, scale_ref, shift_ref, o_ref):
        o_ref[...] = jnp.maximum(y_ref[...] * scale_ref[...] + shift_ref[...], 0.0)

    y2 = y.reshape(N * Cout, P)
    out2 = pl.pallas_call(
        bn_relu_kernel,
        out_shape=jax.ShapeDtypeStruct((N * Cout, P), jnp.float32),
        grid_spec=pltpu.PrefetchScalarGridSpec(
            num_scalar_prefetch=0,
            grid=(N,),
            in_specs=[
                pl.BlockSpec((Cout, P), lambda n: (n, 0)),
                pl.BlockSpec((Cout, 1), lambda n: (n, 0)),
                pl.BlockSpec((Cout, 1), lambda n: (n, 0)),
            ],
            out_specs=pl.BlockSpec((Cout, P), lambda n: (n, 0)),
        ),
        compiler_params=pltpu.CompilerParams(
            dimension_semantics=("parallel",),
            vmem_limit_bytes=32 * 1024 * 1024,
        ),
    )(y2, scale_rows, shift_rows)

    # Extract valid anchors -> PyTorch NCDHW output (wrapper-side layout plumbing).
    out = out2.reshape(N, Cout, P)[:, :, :D * Hp * Wp]
    out = out.reshape(N, Cout, D, Hp, Wp)[:, :, :, :H, :W]
    return out


def reference(x_ncdhw, w_oidhw, gamma, beta):
    y = lax.conv_general_dilated(
        x_ncdhw, w_oidhw, window_strides=(1, 1, 1),
        padding=((1, 1), (1, 1), (1, 1)),
        dimension_numbers=("NCDHW", "OIDHW", "NCDHW"))
    mean = jnp.mean(y, axis=(0, 2, 3, 4), keepdims=True)
    var = jnp.mean((y - mean) ** 2, axis=(0, 2, 3, 4), keepdims=True)
    g = gamma.reshape(1, -1, 1, 1, 1)
    b = beta.reshape(1, -1, 1, 1, 1)
    yn = (y - mean) * lax.rsqrt(var + EPS) * g + b
    return jnp.maximum(yn, 0.0)


if __name__ == "__main__":
    # TODO(synk): nn.BatchNorm3d's running_mean/running_var buffer updates (module
    # state side-effect) are not reproduced; only the forward output is.
    N, Cin, Cout, D, H, W = 2, 4, 8, 8, 8, 8

    key = jax.random.PRNGKey(0)
    kx, kw, kg, kb = jax.random.split(key, 4)

    x = jax.random.normal(kx, (N, Cin, D, H, W), dtype=jnp.float32)          # NCDHW
    w = 0.1 * jax.random.normal(kw, (Cout, Cin, 3, 3, 3), dtype=jnp.float32)  # OIDHW
    gamma = 1.0 + 0.1 * jax.random.normal(kg, (Cout,), dtype=jnp.float32)
    beta = 0.1 * jax.random.normal(kb, (Cout,), dtype=jnp.float32)

    out = jax.block_until_ready(conv3d_bn_relu(x, w, gamma, beta))
    assert out.shape == (N, Cout, D, H, W)

    ref = reference(x, w, gamma, beta)
    max_err = float(jnp.max(jnp.abs(out - ref)))
    assert jnp.allclose(out, ref, atol=2e-3, rtol=2e-3), max_err

    print("KERNEL_OK")
</pallas_src>

<mosaic_0001>
module attributes {stable_mosaic.version = 11 : i64} {
  func.func @conv_stats_kernel(%arg0: i32, %arg1: memref<1x4x1152xf32, #tpu.memory_space<vmem>>, %arg2: memref<8x108xf32, #tpu.memory_space<vmem>>, %arg3: memref<1x896xf32, #tpu.memory_space<vmem>>, %arg4: memref<1x8x896xf32, #tpu.memory_space<vmem>>, %arg5: memref<1x8x1xf32, #tpu.memory_space<vmem>>, %arg6: memref<1x8x1xf32, #tpu.memory_space<vmem>>, %arg7: memref<108x896xf32, #tpu.memory_space<vmem>>) attributes {dimension_semantics = [#tpu.dimension_semantics<parallel>], iteration_bounds = array<i64: 2>, scalar_prefetch = 0 : i64, scratch_operands = 1 : i64, tpu.core_type = #tpu.core_type<tc>, window_params = [{transform_indices = @transform_0, window_bounds = array<i64: 1, 4, 1152>}, {pipeline_mode = #tpu.pipeline_mode<synchronous>, transform_indices = @transform_1, window_bounds = array<i64: 8, 108>}, {pipeline_mode = #tpu.pipeline_mode<synchronous>, transform_indices = @transform_2, window_bounds = array<i64: 1, 896>}, {transform_indices = @transform_3, window_bounds = array<i64: 1, 8, 896>}, {transform_indices = @transform_4, window_bounds = array<i64: 1, 8, 1>}, {transform_indices = @transform_5, window_bounds = array<i64: 1, 8, 1>}]} {
    %c0 = arith.constant 0 : index
    %c0_0 = arith.constant 0 : index
    %c0_1 = arith.constant 0 : index
    %0 = vector.load %arg1[%c0, %c0_0, %c0_1] : memref<1x4x1152xf32, #tpu.memory_space<vmem>>, vector<1x4x896xf32>
    %1 = vector.shape_cast %0 : vector<1x4x896xf32> to vector<4x896xf32>
    %c0_2 = arith.constant 0 : index
    %c0_3 = arith.constant 0 : index
    %2 = vector.load %arg7[%c0_2, %c0_3] : memref<108x896xf32, #tpu.memory_space<vmem>>, vector<4x896xf32>
    tpu.vector_store %arg7[%c0_2, %c0_3], %1 {strides = array<i32>} : memref<108x896xf32, #tpu.memory_space<vmem>>, vector<4x896xf32>,
    %c0_4 = arith.constant 0 : index
    %c0_5 = arith.constant 0 : index
    %c1 = arith.constant 1 : index
    %3 = vector.load %arg1[%c0_4, %c0_5, %c1] : memref<1x4x1152xf32, #tpu.memory_space<vmem>>, vector<1x4x896xf32>
    %4 = vector.shape_cast %3 : vector<1x4x896xf32> to vector<4x896xf32>
    %c4 = arith.constant 4 : index
    %c0_6 = arith.constant 0 : index
    %5 = vector.load %arg7[%c4, %c0_6] : memref<108x896xf32, #tpu.memory_space<vmem>>, vector<4x896xf32>
    tpu.vector_store %arg7[%c4, %c0_6], %4 {strides = array<i32>} : memref<108x896xf32, #tpu.memory_space<vmem>>, vector<4x896xf32>,
    %c0_7 = arith.constant 0 : index
    %c0_8 = arith.constant 0 : index
    %c2 = arith.constant 2 : index
    %6 = vector.load %arg1[%c0_7, %c0_8, %c2] : memref<1x4x1152xf32, #tpu.memory_space<vmem>>, vector<1x4x896xf32>
    %7 = vector.shape_cast %6 : vector<1x4x896xf32> to vector<4x896xf32>
    %c8 = arith.constant 8 : index
    %c0_9 = arith.constant 0 : index
    %8 = vector.load %arg7[%c8, %c0_9] : memref<108x896xf32, #tpu.memory_space<vmem>>, vector<4x896xf32>
    tpu.vector_store %arg7[%c8, %c0_9], %7 {strides = array<i32>} : memref<108x896xf32, #tpu.memory_space<vmem>>, vector<4x896xf32>,
    %c0_10 = arith.constant 0 : index
    %c0_11 = arith.constant 0 : index
    %c10 = arith.constant 10 : index
    %9 = vector.load %arg1[%c0_10, %c0_11, %c10] : memref<1x4x1152xf32, #tpu.memory_space<vmem>>, vector<1x4x896xf32>
    %10 = vector.shape_cast %9 : vector<1x4x896xf32> to vector<4x896xf32>
    %c12 = arith.constant 12 : index
    %c0_12 = arith.constant 0 : index
    %11 = vector.load %arg7[%c12, %c0_12] : memref<108x896xf32, #tpu.memory_space<vmem>>, vector<4x896xf32>
    tpu.vector_store %arg7[%c12, %c0_12], %10 {strides = array<i32>} : memref<108x896xf32, #tpu.memory_space<vmem>>, vector<4x896xf32>,
    %c0_13 = arith.constant 0 : index
    %c0_14 = arith.constant 0 : index
    %c11 = arith.constant 11 : index
    %12 = vector.load %arg1[%c0_13, %c0_14, %c11] : memref<1x4x1152xf32, #tpu.memory_space<vmem>>, vector<1x4x896xf32>
    %13 = vector.shape_cast %12 : vector<1x4x896xf32> to vector<4x896xf32>
    %c16 = arith.constant 16 : index
    %c0_15 = arith.constant 0 : index
    %14 = vector.load %arg7[%c16, %c0_15] : memref<108x896xf32, #tpu.memory_space<vmem>>, vector<4x896xf32>
    tpu.vector_store %arg7[%c16, %c0_15], %13 {strides = array<i32>} : memref<108x896xf32, #tpu.memory_space<vmem>>, vector<4x896xf32>,
    %c0_16 = arith.constant 0 : index
    %c0_17 = arith.constant 0 : index
    %c12_18 = arith.constant 12 : index
    %15 = vector.load %arg1[%c0_16, %c0_17, %c12_18] : memref<1x4x1152xf32, #tpu.memory_space<vmem>>, vector<1x4x896xf32>
    %16 = vector.shape_cast %15 : vector<1x4x896xf32> to vector<4x896xf32>
    %c20 = arith.constant 20 : index
    %c0_19 = arith.constant 0 : index
    %17 = vector.load %arg7[%c20, %c0_19] : memref<108x896xf32, #tpu.memory_space<vmem>>, vector<4x896xf32>
    tpu.vector_store %arg7[%c20, %c0_19], %16 {strides = array<i32>} : memref<108x896xf32, #tpu.memory_space<vmem>>, vector<4x896xf32>,
    %c0_20 = arith.constant 0 : index
    %c0_21 = arith.constant 0 : index
    %c20_22 = arith.constant 20 : index
    %18 = vector.load %arg1[%c0_20, %c0_21, %c20_22] : memref<1x4x1152xf32, #tpu.memory_space<vmem>>, vector<1x4x896xf32>
    %19 = vector.shape_cast %18 : vector<1x4x896xf32> to vector<4x896xf32>
    %c24 = arith.constant 24 : index
    %c0_23 = arith.constant 0 : index
    %20 = vector.load %arg7[%c24, %c0_23] : memref<108x896xf32, #tpu.memory_space<vmem>>, vector<4x896xf32>
    tpu.vector_store %arg7[%c24, %c0_23], %19 {strides = array<i32>} : memref<108x896xf32, #tpu.memory_space<vmem>>, vector<4x896xf32>,
    %c0_24 = arith.constant 0 : index
    %c0_25 = arith.constant 0 : index
    %c21 = arith.constant 21 : index
    %21 = vector.load %arg1[%c0_24, %c0_25, %c21] : memref<1x4x1152xf32, #tpu.memory_space<vmem>>, vector<1x4x896xf32>
    %22 = vector.shape_cast %21 : vector<1x4x896xf32> to vector<4x896xf32>
    %c28 = arith.constant 28 : index
    %c0_26 = arith.constant 0 : index
    %23 = vector.load %arg7[%c28, %c0_26] : memref<108x896xf32, #tpu.memory_space<vmem>>, vector<4x896xf32>
    tpu.vector_store %arg7[%c28, %c0_26], %22 {strides = array<i32>} : memref<108x896xf32, #tpu.memory_space<vmem>>, vector<4x896xf32>,
    %c0_27 = arith.constant 0 : index
    %c0_28 = arith.constant 0 : index
    %c22 = arith.constant 22 : index
    %24 = vector.load %arg1[%c0_27, %c0_28, %c22] : memref<1x4x1152xf32, #tpu.memory_space<vmem>>, vector<1x4x896xf32>
    %25 = vector.shape_cast %24 : vector<1x4x896xf32> to vector<4x896xf32>
    %c32 = arith.constant 32 : index
    %c0_29 = arith.constant 0 : index
    %26 = vector.load %arg7[%c32, %c0_29] : memref<108x896xf32, #tpu.memory_space<vmem>>, vector<4x896xf32>
    tpu.vector_store %arg7[%c32, %c0_29], %25 {strides = array<i32>} : memref<108x896xf32, #tpu.memory_space<vmem>>, vector<4x896xf32>,
    %c0_30 = arith.constant 0 : index
    %c0_31 = arith.constant 0 : index
    %c100 = arith.constant 100 : index
    %27 = vector.load %arg1[%c0_30, %c0_31, %c100] : memref<1x4x1152xf32, #tpu.memory_space<vmem>>, vector<1x4x896xf32>
    %28 = vector.shape_cast %27 : vector<1x4x896xf32> to vector<4x896xf32>
    %c36 = arith.constant 36 : index
    %c0_32 = arith.constant 0 : index
    %29 = vector.load %arg7[%c36, %c0_32] : memref<108x896xf32, #tpu.memory_space<vmem>>, vector<4x896xf32>
    tpu.vector_store %arg7[%c36, %c0_32], %28 {strides = array<i32>} : memref<108x896xf32, #tpu.memory_space<vmem>>, vector<4x896xf32>,
    %c0_33 = arith.constant 0 : index
    %c0_34 = arith.constant 0 : index
    %c101 = arith.constant 101 : index
    %30 = vector.load %arg1[%c0_33, %c0_34, %c101] : memref<1x4x1152xf32, #tpu.memory_space<vmem>>, vector<1x4x896xf32>
    %31 = vector.shape_cast %30 : vector<1x4x896xf32> to vector<4x896xf32>
    %c40 = arith.constant 40 : index
    %c0_35 = arith.constant 0 : index
    %32 = vector.load %arg7[%c40, %c0_35] : memref<108x896xf32, #tpu.memory_space<vmem>>, vector<4x896xf32>
    tpu.vector_store %arg7[%c40, %c0_35], %31 {strides = array<i32>} : memref<108x896xf32, #tpu.memory_space<vmem>>, vector<4x896xf32>,
    %c0_36 = arith.constant 0 : index
    %c0_37 = arith.constant 0 : index
    %c102 = arith.constant 102 : index
    %33 = vector.load %arg1[%c0_36, %c0_37, %c102] : memref<1x4x1152xf32, #tpu.memory_space<vmem>>, vector<1x4x896xf32>
    %34 = vector.shape_cast %33 : vector<1x4x896xf32> to vector<4x896xf32>
    %c44 = arith.constant 44 : index
    %c0_38 = arith.constant 0 : index
    %35 = vector.load %arg7[%c44, %c0_38] : memref<108x896xf32, #tpu.memory_space<vmem>>, vector<4x896xf32>
    tpu.vector_store %arg7[%c44, %c0_38], %34 {strides = array<i32>} : memref<108x896xf32, #tpu.memory_space<vmem>>, vector<4x896xf32>,
    %c0_39 = arith.constant 0 : index
    %c0_40 = arith.constant 0 : index
    %c110 = arith.constant 110 : index
    %36 = vector.load %arg1[%c0_39, %c0_40, %c110] : memref<1x4x1152xf32, #tpu.memory_space<vmem>>, vector<1x4x896xf32>
    %37 = vector.shape_cast %36 : vector<1x4x896xf32> to vector<4x896xf32>
    %c48 = arith.constant 48 : index
    %c0_41 = arith.constant 0 : index
    %38 = vector.load %arg7[%c48, %c0_41] : memref<108x896xf32, #tpu.memory_space<vmem>>, vector<4x896xf32>
    tpu.vector_store %arg7[%c48, %c0_41], %37 {strides = array<i32>} : memref<108x896xf32, #tpu.memory_space<vmem>>, vector<4x896xf32>,
    %c0_42 = arith.constant 0 : index
    %c0_43 = arith.constant 0 : index
    %c111 = arith.constant 111 : index
    %39 = vector.load %arg1[%c0_42, %c0_43, %c111] : memref<1x4x1152xf32, #tpu.memory_space<vmem>>, vector<1x4x896xf32>
    %40 = vector.shape_cast %39 : vector<1x4x896xf32> to vector<4x896xf32>
    %c52 = arith.constant 52 : index
    %c0_44 = arith.constant 0 : index
    %41 = vector.load %arg7[%c52, %c0_44] : memref<108x896xf32, #tpu.memory_space<vmem>>, vector<4x896xf32>
    tpu.vector_store %arg7[%c52, %c0_44], %40 {strides = array<i32>} : memref<108x896xf32, #tpu.memory_space<vmem>>, vector<4x896xf32>,
    %c0_45 = arith.constant 0 : index
    %c0_46 = arith.constant 0 : index
    %c112 = arith.constant 112 : index
    %42 = vector.load %arg1[%c0_45, %c0_46, %c112] : memref<1x4x1152xf32, #tpu.memory_space<vmem>>, vector<1x4x896xf32>
    %43 = vector.shape_cast %42 : vector<1x4x896xf32> to vector<4x896xf32>
    %c56 = arith.constant 56 : index
    %c0_47 = arith.constant 0 : index
    %44 = vector.load %arg7[%c56, %c0_47] : memref<108x896xf32, #tpu.memory_space<vmem>>, vector<4x896xf32>
    tpu.vector_store %arg7[%c56, %c0_47], %43 {strides = array<i32>} : memref<108x896xf32, #tpu.memory_space<vmem>>, vector<4x896xf32>,
    %c0_48 = arith.constant 0 : index
    %c0_49 = arith.constant 0 : index
    %c120 = arith.constant 120 : index
    %45 = vector.load %arg1[%c0_48, %c0_49, %c120] : memref<1x4x1152xf32, #tpu.memory_space<vmem>>, vector<1x4x896xf32>
    %46 = vector.shape_cast %45 : vector<1x4x896xf32> to vector<4x896xf32>
    %c60 = arith.constant 60 : index
    %c0_50 = arith.constant 0 : index
    %47 = vector.load %arg7[%c60, %c0_50] : memref<108x896xf32, #tpu.memory_space<vmem>>, vector<4x896xf32>
    tpu.vector_store %arg7[%c60, %c0_50], %46 {strides = array<i32>} : memref<108x896xf32, #tpu.memory_space<vmem>>, vector<4x896xf32>,
    %c0_51 = arith.constant 0 : index
    %c0_52 = arith.constant 0 : index
    %c121 = arith.constant 121 : index
    %48 = vector.load %arg1[%c0_51, %c0_52, %c121] : memref<1x4x1152xf32, #tpu.memory_space<vmem>>, vector<1x4x896xf32>
    %49 = vector.shape_cast %48 : vector<1x4x896xf32> to vector<4x896xf32>
    %c64 = arith.constant 64 : index
    %c0_53 = arith.constant 0 : index
    %50 = vector.load %arg7[%c64, %c0_53] : memref<108x896xf32, #tpu.memory_space<vmem>>, vector<4x896xf32>
    tpu.vector_store %arg7[%c64, %c0_53], %49 {strides = array<i32>} : memref<108x896xf32, #tpu.memory_space<vmem>>, vector<4x896xf32>,
    %c0_54 = arith.constant 0 : index
    %c0_55 = arith.constant 0 : index
    %c122 = arith.constant 122 : index
    %51 = vector.load %arg1[%c0_54, %c0_55, %c122] : memref<1x4x1152xf32, #tpu.memory_space<vmem>>, vector<1x4x896xf32>
    %52 = vector.shape_cast %51 : vector<1x4x896xf32> to vector<4x896xf32>
    %c68 = arith.constant 68 : index
    %c0_56 = arith.constant 0 : index
    %53 = vector.load %arg7[%c68, %c0_56] : memref<108x896xf32, #tpu.memory_space<vmem>>, vector<4x896xf32>
    tpu.vector_store %arg7[%c68, %c0_56], %52 {strides = array<i32>} : memref<108x896xf32, #tpu.memory_space<vmem>>, vector<4x896xf32>,
    %c0_57 = arith.constant 0 : index
    %c0_58 = arith.constant 0 : index
    %c200 = arith.constant 200 : index
    %54 = vector.load %arg1[%c0_57, %c0_58, %c200] : memref<1x4x1152xf32, #tpu.memory_space<vmem>>, vector<1x4x896xf32>
    %55 = vector.shape_cast %54 : vector<1x4x896xf32> to vector<4x896xf32>
    %c72 = arith.constant 72 : index
    %c0_59 = arith.constant 0 : index
    %56 = vector.load %arg7[%c72, %c0_59] : memref<108x896xf32, #tpu.memory_space<vmem>>, vector<4x896xf32>
    tpu.vector_store %arg7[%c72, %c0_59], %55 {strides = array<i32>} : memref<108x896xf32, #tpu.memory_space<vmem>>, vector<4x896xf32>,
    %c0_60 = arith.constant 0 : index
    %c0_61 = arith.constant 0 : index
    %c201 = arith.constant 201 : index
    %57 = vector.load %arg1[%c0_60, %c0_61, %c201] : memref<1x4x1152xf32, #tpu.memory_space<vmem>>, vector<1x4x896xf32>
    %58 = vector.shape_cast %57 : vector<1x4x896xf32> to vector<4x896xf32>
    %c76 = arith.constant 76 : index
    %c0_62 = arith.constant 0 : index
    %59 = vector.load %arg7[%c76, %c0_62] : memref<108x896xf32, #tpu.memory_space<vmem>>, vector<4x896xf32>
    tpu.vector_store %arg7[%c76, %c0_62], %58 {strides = array<i32>} : memref<108x896xf32, #tpu.memory_space<vmem>>, vector<4x896xf32>,
    %c0_63 = arith.constant 0 : index
    %c0_64 = arith.constant 0 : index
    %c202 = arith.constant 202 : index
    %60 = vector.load %arg1[%c0_63, %c0_64, %c202] : memref<1x4x1152xf32, #tpu.memory_space<vmem>>, vector<1x4x896xf32>
    %61 = vector.shape_cast %60 : vector<1x4x896xf32> to vector<4x896xf32>
    %c80 = arith.constant 80 : index
    %c0_65 = arith.constant 0 : index
    %62 = vector.load %arg7[%c80, %c0_65] : memref<108x896xf32, #tpu.memory_space<vmem>>, vector<4x896xf32>
    tpu.vector_store %arg7[%c80, %c0_65], %61 {strides = array<i32>} : memref<108x896xf32, #tpu.memory_space<vmem>>, vector<4x896xf32>,
    %c0_66 = arith.constant 0 : index
    %c0_67 = arith.constant 0 : index
    %c210 = arith.constant 210 : index
    %63 = vector.load %arg1[%c0_66, %c0_67, %c210] : memref<1x4x1152xf32, #tpu.memory_space<vmem>>, vector<1x4x896xf32>
    %64 = vector.shape_cast %63 : vector<1x4x896xf32> to vector<4x896xf32>
    %c84 = arith.constant 84 : index
    %c0_68 = arith.constant 0 : index
    %65 = vector.load %arg7[%c84, %c0_68] : memref<108x896xf32, #tpu.memory_space<vmem>>, vector<4x896xf32>
    tpu.vector_store %arg7[%c84, %c0_68], %64 {strides = array<i32>} : memref<108x896xf32, #tpu.memory_space<vmem>>, vector<4x896xf32>,
    %c0_69 = arith.constant 0 : index
    %c0_70 = arith.constant 0 : index
    %c211 = arith.constant 211 : index
    %66 = vector.load %arg1[%c0_69, %c0_70, %c211] : memref<1x4x1152xf32, #tpu.memory_space<vmem>>, vector<1x4x896xf32>
    %67 = vector.shape_cast %66 : vector<1x4x896xf32> to vector<4x896xf32>
    %c88 = arith.constant 88 : index
    %c0_71 = arith.constant 0 : index
    %68 = vector.load %arg7[%c88, %c0_71] : memref<108x896xf32, #tpu.memory_space<vmem>>, vector<4x896xf32>
    tpu.vector_store %arg7[%c88, %c0_71], %67 {strides = array<i32>} : memref<108x896xf32, #tpu.memory_space<vmem>>, vector<4x896xf32>,
    %c0_72 = arith.constant 0 : index
    %c0_73 = arith.constant 0 : index
    %c212 = arith.constant 212 : index
    %69 = vector.load %arg1[%c0_72, %c0_73, %c212] : memref<1x4x1152xf32, #tpu.memory_space<vmem>>, vector<1x4x896xf32>
    %70 = vector.shape_cast %69 : vector<1x4x896xf32> to vector<4x896xf32>
    %c92 = arith.constant 92 : index
    %c0_74 = arith.constant 0 : index
    %71 = vector.load %arg7[%c92, %c0_74] : memref<108x896xf32, #tpu.memory_space<vmem>>, vector<4x896xf32>
    tpu.vector_store %arg7[%c92, %c0_74], %70 {strides = array<i32>} : memref<108x896xf32, #tpu.memory_space<vmem>>, vector<4x896xf32>,
    %c0_75 = arith.constant 0 : index
    %c0_76 = arith.constant 0 : index
    %c220 = arith.constant 220 : index
    %72 = vector.load %arg1[%c0_75, %c0_76, %c220] : memref<1x4x1152xf32, #tpu.memory_space<vmem>>, vector<1x4x896xf32>
    %73 = vector.shape_cast %72 : vector<1x4x896xf32> to vector<4x896xf32>
    %c96 = arith.constant 96 : index
    %c0_77 = arith.constant 0 : index
    %74 = vector.load %arg7[%c96, %c0_77] : memref<108x896xf32, #tpu.memory_space<vmem>>, vector<4x896xf32>
    tpu.vector_store %arg7[%c96, %c0_77], %73 {strides = array<i32>} : memref<108x896xf32, #tpu.memory_space<vmem>>, vector<4x896xf32>,
    %c0_78 = arith.constant 0 : index
    %c0_79 = arith.constant 0 : index
    %c221 = arith.constant 221 : index
    %75 = vector.load %arg1[%c0_78, %c0_79, %c221] : memref<1x4x1152xf32, #tpu.memory_space<vmem>>, vector<1x4x896xf32>
    %76 = vector.shape_cast %75 : vector<1x4x896xf32> to vector<4x896xf32>
    %c100_80 = arith.constant 100 : index
    %c0_81 = arith.constant 0 : index
    %77 = vector.load %arg7[%c100_80, %c0_81] : memref<108x896xf32, #tpu.memory_space<vmem>>, vector<4x896xf32>
    tpu.vector_store %arg7[%c100_80, %c0_81], %76 {strides = array<i32>} : memref<108x896xf32, #tpu.memory_space<vmem>>, vector<4x896xf32>,
    %c0_82 = arith.constant 0 : index
    %c0_83 = arith.constant 0 : index
    %c222 = arith.constant 222 : index
    %78 = vector.load %arg1[%c0_82, %c0_83, %c222] : memref<1x4x1152xf32, #tpu.memory_space<vmem>>, vector<1x4x896xf32>
    %79 = vector.shape_cast %78 : vector<1x4x896xf32> to vector<4x896xf32>
    %c104 = arith.constant 104 : index
    %c0_84 = arith.constant 0 : index
    %80 = vector.load %arg7[%c104, %c0_84] : memref<108x896xf32, #tpu.memory_space<vmem>>, vector<4x896xf32>
    tpu.vector_store %arg7[%c104, %c0_84], %79 {strides = array<i32>} : memref<108x896xf32, #tpu.memory_space<vmem>>, vector<4x896xf32>,
    %c0_85 = arith.constant 0 : index
    %c0_86 = arith.constant 0 : index
    %81 = vector.load %arg2[%c0_85, %c0_86] : memref<8x108xf32, #tpu.memory_space<vmem>>, vector<8x108xf32>
    %c0_87 = arith.constant 0 : index
    %c0_88 = arith.constant 0 : index
    %82 = vector.load %arg7[%c0_87, %c0_88] : memref<108x896xf32, #tpu.memory_space<vmem>>, vector<108x896xf32>
    %cst = arith.constant dense<0.000000e+00> : vector<8x896xf32>
    %83 = tpu.matmul %81, %82, %cst {dimension_numbers = #tpu.dot_dimension_numbers<[1], [0], [0], [1], [0, 0, 1, 1], [], []>} : vector<8x108xf32>, vector<108x896xf32>, vector<8x896xf32> -> vector<8x896xf32>
    %c0_89 = arith.constant 0 : index
    %c0_90 = arith.constant 0 : index
    %c0_91 = arith.constant 0 : index
    %84 = vector.load %arg4[%c0_89, %c0_90, %c0_91] : memref<1x8x896xf32, #tpu.memory_space<vmem>>, vector<1x8x896xf32>
    %85 = vector.shape_cast %84 : vector<1x8x896xf32> to vector<8x896xf32>
    %86 = vector.shape_cast %83 : vector<8x896xf32> to vector<1x8x896xf32>
    tpu.vector_store %arg4[%c0_89, %c0_90, %c0_91], %86 {strides = array<i32>} : memref<1x8x896xf32, #tpu.memory_space<vmem>>, vector<1x8x896xf32>,
    %c0_92 = arith.constant 0 : index
    %c0_93 = arith.constant 0 : index
    %87 = vector.load %arg3[%c0_92, %c0_93] : memref<1x896xf32, #tpu.memory_space<vmem>>, vector<1x896xf32>
    %88 = vector.broadcast %87 : vector<1x896xf32> to vector<8x896xf32>
    %89 = arith.mulf %83, %88 : vector<8x896xf32>
    %cst_94 = arith.constant dense<0.000000e+00> : vector<8xf32>
    %90 = vector.multi_reduction <add>, %89, %cst_94 [1] : vector<8x896xf32> to vector<8xf32>
    %91 = vector.shape_cast %90 : vector<8xf32> to vector<8x1xf32>
    %c0_95 = arith.constant 0 : index
    %c0_96 = arith.constant 0 : index
    %c0_97 = arith.constant 0 : index
    %92 = vector.load %arg5[%c0_95, %c0_96, %c0_97] : memref<1x8x1xf32, #tpu.memory_space<vmem>>, vector<1x8x1xf32>
    %93 = vector.shape_cast %92 : vector<1x8x1xf32> to vector<8x1xf32>
    %94 = vector.shape_cast %91 : vector<8x1xf32> to vector<1x8x1xf32>
    tpu.vector_store %arg5[%c0_95, %c0_96, %c0_97], %94 {strides = array<i32>} : memref<1x8x1xf32, #tpu.memory_space<vmem>>, vector<1x8x1xf32>,
    %95 = arith.mulf %89, %83 : vector<8x896xf32>
    %cst_98 = arith.constant dense<0.000000e+00> : vector<8xf32>
    %96 = vector.multi_reduction <add>, %95, %cst_98 [1] : vector<8x896xf32> to vector<8xf32>
    %97 = vector.shape_cast %96 : vector<8xf32> to vector<8x1xf32>
    %c0_99 = arith.constant 0 : index
    %c0_100 = arith.constant 0 : index
    %c0_101 = arith.constant 0 : index
    %98 = vector.load %arg6[%c0_99, %c0_100, %c0_101] : memref<1x8x1xf32, #tpu.memory_space<vmem>>, vector<1x8x1xf32>
    %99 = vector.shape_cast %98 : vector<1x8x1xf32> to vector<8x1xf32>
    %100 = vector.shape_cast %97 : vector<8x1xf32> to vector<1x8x1xf32>
    tpu.vector_store %arg6[%c0_99, %c0_100, %c0_101], %100 {strides = array<i32>} : memref<1x8x1xf32, #tpu.memory_space<vmem>>, vector<1x8x1xf32>,
    return
  }
  func.func @transform_0(%arg0: i32) -> (i32, i32, i32) {
    %c0_i32 = arith.constant 0 : i32
    %c0_i32_0 = arith.constant 0 : i32
    %c0_i32_1 = arith.constant 0 : i32
    return %arg0, %c0_i32, %c0_i32_0 : i32, i32, i32
  }
  func.func @transform_1(%arg0: i32) -> (i32, i32) {
    %c0_i32 = arith.constant 0 : i32
    %c0_i32_0 = arith.constant 0 : i32
    %c0_i32_1 = arith.constant 0 : i32
    return %c0_i32, %c0_i32_0 : i32, i32
  }
  func.func @transform_2(%arg0: i32) -> (i32, i32) {
    %c0_i32 = arith.constant 0 : i32
    %c0_i32_0 = arith.constant 0 : i32
    %c0_i32_1 = arith.constant 0 : i32
    return %c0_i32, %c0_i32_0 : i32, i32
  }
  func.func @transform_3(%arg0: i32) -> (i32, i32, i32) {
    %c0_i32 = arith.constant 0 : i32
    %c0_i32_0 = arith.constant 0 : i32
    %c0_i32_1 = arith.constant 0 : i32
    return %arg0, %c0_i32, %c0_i32_0 : i32, i32, i32
  }
  func.func @transform_4(%arg0: i32) -> (i32, i32, i32) {
    %c0_i32 = arith.constant 0 : i32
    %c0_i32_0 = arith.constant 0 : i32
    %c0_i32_1 = arith.constant 0 : i32
    return %arg0, %c0_i32, %c0_i32_0 : i32, i32, i32
  }
  func.func @transform_5(%arg0: i32) -> (i32, i32, i32) {
    %c0_i32 = arith.constant 0 : i32
    %c0_i32_0 = arith.constant 0 : i32
    %c0_i32_1 = arith.constant 0 : i32
    return %arg0, %c0_i32, %c0_i32_0 : i32, i32, i32
  }
}

</mosaic_0001>

<bundles_post_ra>
// kernel: tpu_custom_call.1
= control target key start
LH: loop header
LB: loop body
LE: loop exit
PB: predicated region body
PF: predicated region fallthrough
CT: control target
= control target key end

     0   :  { %11 = vsyncpa [#allocation4], 0  ;;  %s3893_s0 = inlined_call_operand.hbm [shape: f32[2,4,1152], index: 0, kind: input, shape index: {}]   ;;  %s3894_s1 = inlined_call_operand.hbm [shape: f32[8,108], index: 1, kind: input, shape index: {}]   ;;  %s3895_s2 = inlined_call_operand.vmem [shape: f32[1,896], index: 2, kind: input, shape index: {}]   ;;  %s3896_s3 = inlined_call_operand.hbm [shape: f32[2,8,896], index: 3, kind: output, shape index: {0}]   ;;  %s3897_s4 = inlined_call_operand.vmem [shape: f32[2,8,1], index: 4, kind: output, shape index: {1}]   ;;  %s3898_s5 = inlined_call_operand.vmem [shape: f32[2,8,1], index: 5, kind: output, shape index: {2}]  }
   0x1   :  { %13 = vsyncpa [#allocation4 + $0x1], 0 }
   0x2   :  { %14 = vsyncpa [#allocation7], 0 }
   0x3   :  { %15 = vsyncpa [#allocation5], 0 }
   0x4   :  { %17 = vsyncpa [#allocation5 + $0x1], 0  ;;  %s2721_s18 = smov 0   ;;  %s2723_s19 = smov 0  }
   0x5   :  { %s2725_s20 = smov 0   ;;  %s2727_s21 = smov 0  }
   0x6 LB: > { %s2742_s22 = sadd.s32 4294967295, %s2656_s21   ;;  %s2236_s23 = sadd.s32 4294967294, %s2656_s21   ;;  %s2656_s21 = sphi %s2727_s21, %s4004_s21   ;;  %s2652_s20 = sphi %s2725_s20, %s4003_s20   ;;  %s2648_s19 = sphi %s2723_s19, %s4002_s19   ;;  %s2644_s18 = sphi %s2721_s18, %s4001_s18  }
   0x7   : > { %p43_p0 = scmp.ne.s32.totalorder %s2648_s19, %s2644_s18  ;;  %p3899_p1 = scmp.eq.s32.totalorder %s2742_s22, 0 }
   0x8   : > { %p115_p3 = scmp.eq.s32.totalorder %s2236_s23, 1  ;;  %p2237_p5 = scmp.ge.s32.totalorder %s2656_s21, 1 }
   0x9   : > { %p2751_p4 = por %p3899_p1, %p43_p0  ;;  %p174_p7 = scmp.lt.s32.totalorder %s2656_s21, 3 }
   0xa   : > { %p2756_p6 = por %p115_p3, %p43_p0  ;;  %s2658_s27 = smov [#allocation6]  }
   0xb   : > { %s3936_s24 = scalar_select %p2751_p4, 1, 0 }
   0xc   : > { %s3937_s25 = scalar_select %p2756_p6, 1, 0 }
   0xd   : > { %p2761_p8 = pnand %p2237_p5, %p174_p7  ;;  %s187_s28 = sshll.u32 %s2658_s27, 4  ;;  %s188_s28 = int_to_ptr.vmem [resolvable:$true] %s187_s28 }
   0xe   : > { %s2769_s29 = sadd.s32 1, %s2656_s21   ;;  %s30_s8 = sadd.s32 1, %s2652_s20 }
   0xf   : > { %s3938_s26 = scalar_select %p2761_p8, 1, 0 }
  0x10   : > { %p2430_p10 = pneg %p2761_p8  ;;  %s27_s6 = ssub.s32 %s2656_s21, %s2769_s29 }
  0x11   : > { %p2779_p12 = scmp.eq.s32.totalorder %s27_s6, 0  ;;  %s2528_s11 = scalar_lea.hbm %s3894_s1, 128 }
  0x12   : > { %p2773_p11 = pnand %p2430_p10, %p3899_p1  ;;  %p2529_p0 = scmp.ne.s32.totalorder %s3894_s1, %s2528_s11 }
  0x13   : > { %s3940_s7 = scalar_select %p2779_p12, 1, 0 }
  0x14   : > { %p2530_p3 = pneg %p2773_p11  ;;  %p2535_p10 = scmp.lt.u32.totalorder %s2528_s11, %s3894_s1 }
  0x16   : > { %p2531_p5 = pnand %p2530_p3, %p2529_p0 }
  0x18   : > { %p2532_p7 = pneg %p2531_p5 }
  0x1a   : > { %p2537_p9 = pnand %p2535_p10, %p2532_p7 }
  0x1c   : > { %2540 = shalt.err (!%p2537_p9)
}
  0x1d   : > { %s2541_s16 = scalar_lea.vmem %s188_s28, 128  ;;  %p2549_p6 = scmp.lt.s32.totalorder %s188_s28, %s188_s28 }
  0x1e   : > { %p2542_p1 = scmp.ne.s32.totalorder %s188_s28, %s2541_s16  ;;  %p2550_p4 = scmp.lt.s32.totalorder %s2541_s16, %s2541_s16 }
  0x20   : > { %p2544_p2 = pnand %p2542_p1, %p2530_p3  ;;  %p2551_p8 = por %p2550_p4, %p2549_p6 }
  0x22   : > { %p2545_p13 = pneg %p2544_p2 }
  0x24   : > { %p2552_p12 = pnand %p2551_p8, %p2545_p13 }
  0x26   : > { %2555 = shalt.err (!%p2552_p12)
}
  0x27   : > { %2433 = dma.hbm_to_vmem [thread:$0]  (!%p2773_p11), %s3894_s1, 128, %s188_s28, [#allocation7]  }
  0x28   : > { %p3941_p1 = scmp.ne.s32.totalorder %s3940_s7, 0  ;;  %p38_p2 = scmp.eq.s32.totalorder %s2656_s21, 0 }
  0x29   : > { %p3942_p4 = scmp.ne.s32.totalorder %s2652_s20, %s2648_s19  ;;  %p3943_p6 = scmp.eq.s32.totalorder %s2742_s22, 1 }
  0x2a   : > { %s2805_s27 = scalar_select %p3941_p1, %s2652_s20, %s30_s8  }
  0x2b   : > { %p2813_p8 = por %p3943_p6, %p3942_p4  ;;  %p2443_p9 = scmp.lt.s32.totalorder %s2656_s21, 2 }
  0x2c   : > { %s201_s6 = sand.u32 1, %s2652_s20   ;;  %p3945_p12 = pmov %p3942_p4 }
  0x2d   : > { %s2417_s9 = smul.u32 36, %s201_s6  ;;  %s202_s14 = scalar_lea.sflag [#allocation4], %s201_s6 }
  0x2e   : > { %p39_p13 = por %p38_p2, %p3945_p12  ;;  %s2418_s10 = smul.u32 576, %s2656_s21 }
  0x2f   : > { %s205_s12 = scalar_lea.vmem [#allocation3], %s2417_s9  ;;  %s2561_s23 = scalar_lea.hbm %s3893_s0, 1152 }
  0x30   : > { %p2823_p0 = pnand %p2443_p9, %p39_p13  ;;  %s2830_s8 = scalar_lea.hbm %s3893_s0, %s2418_s10 }
  0x31   : > { %s213_s13 = sshll.u32 %s205_s12, 4  ;;  %s2556_s15 = scalar_lea.hbm %s2830_s8, 576  ;;  %s2832_s13 = int_to_ptr.vmem [resolvable:$true] %s213_s13 }
  0x32   : > { %p2557_p11 = scmp.ne.s32.totalorder %s2830_s8, %s2556_s15  ;;  %p2558_p3 = pneg %p2823_p0 }
  0x33   : > { %p2562_p10 = scmp.lt.u32.totalorder %s2830_s8, %s3893_s0  ;;  %p2563_p1 = scmp.lt.u32.totalorder %s2561_s23, %s2556_s15 }
  0x34   : > { %p2559_p5 = pnand %p2558_p3, %p2557_p11  ;;  %p2565_p4 = scmp.lt.u32.totalorder %s2556_s15, %s2830_s8 }
  0x35   : > { %p2564_p2 = por %p2563_p1, %p2562_p10 }
  0x36   : > { %p2560_p7 = pneg %p2559_p5 }
  0x37   : > { %p2566_p6 = por %p2565_p4, %p2564_p2 }
  0x39   : > { %p2567_p9 = pnand %p2566_p6, %p2560_p7 }
  0x3b   : > { %2570 = shalt.err (!%p2567_p9)
}
  0x3c   : > { %s2571_s6 = scalar_lea.vmem %s2832_s13, 576  ;;  %s2659_s9 = smov [#allocation3]  }
  0x3d   : > { %p2572_p12 = scmp.ne.s32.totalorder %s2832_s13, %s2571_s6  ;;  %s2576_s7 = sshll.u32 %s2659_s9, 4  ;;  %s2577_s7 = int_to_ptr.vmem [resolvable:$false] %s2576_s7 }
  0x3e   : > { %s2578_s12 = scalar_lea.vmem %s2577_s7, 1152  ;;  %p2579_p5 = scmp.lt.s32.totalorder %s2832_s13, %s2577_s7 }
  0x3f   : > { %p2574_p13 = pnand %p2572_p12, %p2558_p3  ;;  %p2580_p10 = scmp.lt.s32.totalorder %s2578_s12, %s2571_s6 }
  0x41   : > { %p2575_p11 = pneg %p2574_p13  ;;  %p2581_p1 = por %p2580_p10, %p2579_p5 }
  0x43   : > { %p2582_p2 = pnand %p2581_p1, %p2575_p11 }
  0x45   : > { %2585 = shalt.err (!%p2582_p2)
}
  0x46   : > { %2437 = dma.hbm_to_vmem [thread:$0]  (!%p2823_p0), %s2830_s8, 576, %s2832_s13, %s202_s14  }
  0x47   : > { %p3947_p7 = scmp.ne.s32.totalorder %s3938_s26, 0 }
  0x48   : > { %s2862_s15 = sand.u32 (!%p3947_p7), 1, %s2648_s19   ;;  %p3948_p3 = scmp.ne.s32.totalorder (!%p3947_p7), %s3936_s24, 0 }
  0x49   : > { %222 = sbr.rel (%p3947_p7) target bundleno = 987 (0x3db), region = 32  ;;  %s225_s17 = scalar_lea.sflag (!%p3947_p7), [#allocation4], %s2862_s15 }
  0x4a   : > { %s2419_s16 = smul.u32 (!%p3947_p7), 36, %s2862_s15 }
  0x4c   : > { %s2866_s23 = scalar_lea.vmem (!%p3947_p7), [#allocation3], %s2419_s16 }
  0x50   : > { %2631 = dma.done.wait (%p3948_p3), %s225_s17, 576  }
  0x51   : > { %2633 = vsyncadd (%p3948_p3), %s225_s17, 4294966720  ;;  %p3949_p0 = scmp.eq.s32.totalorder %s2742_s22, 0 }
  0x53   : > { %2635 = dma.done.wait (%p3949_p0), [#allocation7], 128   ;;  %p3950_p4 = pmov %p3949_p0 }
  0x54   : > { %v2877_v0 = vld [vmem:[%s2866_s23 + $0x8] sm:$0xff]  ;;  %v2880_v1 = vld [vmem:[%s2866_s23] sm:$0xff]  ;;  %s2660_s26 = smov 127   ;;  %v277_v3 = vld [vmem:[%s2866_s23 + $0x10] sm:$0xff]  ;;  %s2661_s24 = smov 126   ;;  %vm323_vm0 = vcmask 1039360  }
  0x55   : > { %2637 = vsyncadd (%p3950_p4), [#allocation7], 4294967168  ;;  %313 = vrot.lane.b32.xlu1 %v2877_v0, %s2660_s26  ;;  %309 = vrot.lane.b32.xlu0 %v2880_v1, %s2660_s26  ;;  %v2886_v2 = vcombine.low %v2880_v1, %v2880_v1  ;;  %288 = vst [vmem:[#allocation2] sm:$0xf] %v2880_v1  ;;  %v2892_v4 = vld [vmem:[%s2866_s23 + $0x10] sm:$0xff]  ;;  %v2896_v5 = vcombine.high %v2877_v0, %v2877_v0  ;;  %v298_v11 = vld [vmem:[%s2866_s23 + $0x18] sm:$0xff] }
  0x56   : > { %290 = vst [vmem:[#allocation2 + $0x10] sm:$0xf] %v2877_v0  ;;  %v2900_v6 = vcombine.high %v2880_v1, %v2880_v1  ;;  %292 = vst [vmem:[#allocation2 + $0x20] sm:$0xf] %v277_v3  ;;  %v278_v7 = vld [vmem:[%s2866_s23 + $0x18] sm:$0xf]  ;;  %v284_v8 = vcombine.high %v277_v3, %v277_v3  ;;  %v2907_v9 = vcombine.low %v2877_v0, %v2877_v0 }
  0x57   : > { %294 = vst [vmem:[#allocation2 + $0x30] sm:$0xf] %v278_v7  ;;  %291 = vst [vmem:[#allocation2 + $0x18] sm:$0xf] %v2896_v5  ;;  %v2911_v10 = vcombine.low %v2892_v4, %v2892_v4  ;;  %v306_v12 = vcombine.low %v298_v11, %v298_v11  ;;  %s2662_s11 = smov 118   ;;  %s2663_s8 = smov 117  }
  0x58   : > { %289 = vst [vmem:[#allocation2 + $0x8] sm:$0xf] %v2900_v6  ;;  %293 = vst [vmem:[#allocation2 + $0x28] sm:$0xf] %v284_v8  ;;  %s2664_s13 = smov 116   ;;  %s2665_s14 = smov 108  }
  0x59   : > { %317 = vrot.lane.b32.xlu1 %v2892_v4, %s2660_s26  ;;  %307 = vrot.lane.b32.xlu0 %v2886_v2, %s2660_s26  ;;  %s2666_s10 = smov 107   ;;  %s2667_s28 = smov 106   ;;  %vm373_vm1 = vcmask 1031168   ;;  %vm423_vm2 = vcmask 965632   ;;  %vm473_vm3 = vcmask 957440   ;;  %vm523_vm4 = vcmask 949248  }
  0x5a   : > { %s2668_s6 = smov 28   ;;  %s2669_s9 = smov 27   ;;  %vm573_vm5 = vcmask 883712   ;;  %v3092_v3 = vld [vmem:[%s2866_s23 + $0x4] sm:$0xff]  ;;  %vm623_vm6 = vcmask 875520   ;;  %vm673_vm7 = vcmask 867328  }
  0x5b   : > { %s2670_s7 = smov 26   ;;  %s3908_s12 = smov 18   ;;  %vm723_vm8 = vcmask 228352   ;;  %vm773_vm9 = vcmask 220160   ;;  %vm823_vm10 = vcmask 211968   ;;  %vm3935_vm11 = vcmask 146432  }
  0x5c   : > { %s3906_s16 = smov 17   ;;  %s3902_s17 = smov 16   ;;  %vm3934_vm12 = vcmask 138240   ;;  %vm3925_vm13 = vcmask 130048   ;;  %vm3924_vm14 = vcmask 64512   ;;  %vm3929_vm15 = vcmask 56320  }
  0x5d   : > { %311 = vrot.lane.b32.xlu1 %v2907_v9, %s2660_s26  ;;  %315 = vrot.lane.b32.xlu0 %v2911_v10, %s2660_s26 }
  0x61   : > { %321 = vrot.lane.b32.xlu1 %v298_v11, %s2660_s26  ;;  %319 = vrot.lane.b32.xlu0 %v306_v12, %s2660_s26  ;;  %s3904_s26 = smov 8   ;;  %v3107_v12 = vld [vmem:[%s2866_s23 + $0xc] sm:$0xff] }
  0x65   : > { %361 = vrot.lane.b32.xlu1 %v2877_v0, %s2661_s24  ;;  %359 = vrot.lane.b32.xlu0 %v2900_v6, %s2661_s24 }
  0x69   : > { %411 = vrot.lane.b32.xlu1 %v2907_v9, %s2662_s11  ;;  %409 = vrot.lane.b32.xlu0 %v2880_v1, %s2662_s11 }
  0x6d   : > { %407 = vrot.lane.b32.xlu1 %v2886_v2, %s2662_s11  ;;  %357 = vrot.lane.b32.xlu0 %v2880_v1, %s2661_s24 }
  0x71   : > { %365 = vrot.lane.b32.xlu1 %v2892_v4, %s2661_s24  ;;  %363 = vrot.lane.b32.xlu0 %v2896_v5, %s2661_s24 }
  0x75   : > { %415 = vrot.lane.b32.xlu1 %v2911_v10, %s2662_s11  ;;  %413 = vrot.lane.b32.xlu0 %v2877_v0, %s2662_s11 }
  0x79   : > { %461 = vrot.lane.b32.xlu1 %v2877_v0, %s2663_s8  ;;  %459 = vrot.lane.b32.xlu0 %v2900_v6, %s2663_s8 }
  0x7d   : > { %511 = vrot.lane.b32.xlu1 %v2907_v9, %s2664_s13  ;;  %509 = vrot.lane.b32.xlu0 %v2880_v1, %s2664_s13 }
  0x81   : > { %561 = vrot.lane.b32.xlu1 %v2877_v0, %s2665_s14  ;;  %559 = vrot.lane.b32.xlu0 %v2900_v6, %s2665_s14 }
  0x85   : > { %611 = vrot.lane.b32.xlu1 %v2907_v9, %s2666_s10  ;;  %609 = vrot.lane.b32.xlu0 %v2880_v1, %s2666_s10 }
  0x89   : > { %507 = vrot.lane.b32.xlu1 %v2886_v2, %s2664_s13  ;;  %457 = vrot.lane.b32.xlu0 %v2880_v1, %s2663_s8 }
  0x8d   : > { %607 = vrot.lane.b32.xlu1 %v2886_v2, %s2666_s10  ;;  %557 = vrot.lane.b32.xlu0 %v2880_v1, %s2665_s14 }
  0x91   : > { %465 = vrot.lane.b32.xlu1 %v2892_v4, %s2663_s8  ;;  %463 = vrot.lane.b32.xlu0 %v2896_v5, %s2663_s8 }
  0x95   : > { %515 = vrot.lane.b32.xlu1 %v2911_v10, %s2664_s13  ;;  %513 = vrot.lane.b32.xlu0 %v2877_v0, %s2664_s13 }
  0x99   : > { %565 = vrot.lane.b32.xlu1 %v2892_v4, %s2665_s14  ;;  %563 = vrot.lane.b32.xlu0 %v2896_v5, %s2665_s14 }
  0x9d   : > { %615 = vrot.lane.b32.xlu1 %v2911_v10, %s2666_s10  ;;  %613 = vrot.lane.b32.xlu0 %v2877_v0, %s2666_s10 }
  0xa1   : > { %661 = vrot.lane.b32.xlu1 %v2877_v0, %s2667_s28  ;;  %659 = vrot.lane.b32.xlu0 %v2900_v6, %s2667_s28 }
  0xa5   : > { %711 = vrot.lane.b32.xlu1 %v2907_v9, %s2668_s6  ;;  %709 = vrot.lane.b32.xlu0 %v2880_v1, %s2668_s6 }
  0xa9   : > { %761 = vrot.lane.b32.xlu1 %v2877_v0, %s2669_s9  ;;  %759 = vrot.lane.b32.xlu0 %v2900_v6, %s2669_s9 }
  0xad   : > { %811 = vrot.lane.b32.xlu1 %v2907_v9, %s2670_s7  ;;  %809 = vrot.lane.b32.xlu0 %v2880_v1, %s2670_s7 }
  0xb1   : > { %707 = vrot.lane.b32.xlu1 %v2886_v2, %s2668_s6  ;;  %657 = vrot.lane.b32.xlu0 %v2880_v1, %s2667_s28 }
  0xb5   : > { %807 = vrot.lane.b32.xlu1 %v2886_v2, %s2670_s7  ;;  %757 = vrot.lane.b32.xlu0 %v2880_v1, %s2669_s9 }
  0xb9   : > { %665 = vrot.lane.b32.xlu1 %v2892_v4, %s2667_s28  ;;  %663 = vrot.lane.b32.xlu0 %v2896_v5, %s2667_s28 }
  0xbd   : > { %715 = vrot.lane.b32.xlu1 %v2911_v10, %s2668_s6  ;;  %713 = vrot.lane.b32.xlu0 %v2877_v0, %s2668_s6 }
  0xc1   : > { %765 = vrot.lane.b32.xlu1 %v2892_v4, %s2669_s9  ;;  %763 = vrot.lane.b32.xlu0 %v2896_v5, %s2669_s9 }
  0xc5   : > { %815 = vrot.lane.b32.xlu1 %v2911_v10, %s2670_s7  ;;  %813 = vrot.lane.b32.xlu0 %v2877_v0, %s2670_s7 }
  0xc7   : > { %v314_v13 = vpop.permute.xlu1 %313  ;;  %v310_v14 = vpop.permute.xlu0 %309 }
  0xc9   : > { %861 = vrot.lane.b32.xlu1 %v2877_v0, %s3908_s12  ;;  %859 = vrot.lane.b32.xlu0 %v2900_v6, %s3908_s12 }
  0xcb   : > { %v318_v15 = vpop.permute.xlu1 %317  ;;  %v308_v16 = vpop.permute.xlu0 %307 }
  0xcc   : > { %v324_v17 = vsel %vm323_vm0, %v308_v16, %v310_v14 }
  0xcd   : > { %338 = vst [vmem:[#allocation2] sm:$0xf0] %v324_v17  ;;  %911 = vrot.lane.b32.xlu1 %v2907_v9, %s3906_s16  ;;  %909 = vrot.lane.b32.xlu0 %v2880_v1, %s3906_s16 }
  0xcf   : > { %v312_v18 = vpop.permute.xlu1 %311  ;;  %v316_v19 = vpop.permute.xlu0 %315 }
  0xd0   : > { %v325_v20 = vsel %vm323_vm0, %v310_v14, %v312_v18  ;;  %v326_v21 = vsel %vm323_vm0, %v312_v18, %v314_v13  ;;  %v327_v22 = vsel %vm323_vm0, %v314_v13, %v316_v19  ;;  %v328_v23 = vsel %vm323_vm0, %v316_v19, %v318_v15 }
  0xd1   : > { %339 = vst [vmem:[#allocation2 + $0x8] sm:$0xf0] %v325_v20  ;;  %340 = vst [vmem:[#allocation2 + $0x10] sm:$0xf0] %v326_v21  ;;  %961 = vrot.lane.b32.xlu1 %v2877_v0, %s3902_s17  ;;  %959 = vrot.lane.b32.xlu0 %v2900_v6, %s3902_s17 }
  0xd2   : > { %341 = vst [vmem:[#allocation2 + $0x18] sm:$0xf0] %v327_v22  ;;  %342 = vst [vmem:[#allocation2 + $0x20] sm:$0xf0] %v328_v23 }
  0xd3   : > { %v322_v24 = vpop.permute.xlu1 %321  ;;  %v320_v25 = vpop.permute.xlu0 %319 }
  0xd4   : > { %v329_v26 = vsel %vm323_vm0, %v318_v15, %v320_v25  ;;  %v330_v27 = vsel %vm323_vm0, %v320_v25, %v322_v24  ;;  %v1596_v49 = vld [vmem:[#allocation2] sm:$0xff]  ;;  %vm3928_vm0 = vcmask 48128  }
  0xd5   : > { %343 = vst [vmem:[#allocation2 + $0x28] sm:$0xf0] %v329_v26  ;;  %344 = vst [vmem:[#allocation2 + $0x30] sm:$0xf0] %v330_v27  ;;  %1011 = vrot.lane.b32.xlu1 %v2907_v9, %s3904_s26  ;;  %1009 = vrot.lane.b32.xlu0 %v2880_v1, %s3904_s26  ;;  %v3131_v26 = vcombine.low %v3092_v3, %v3092_v3 }
  0xd7   : > { %v362_v28 = vpop.permute.xlu1 %361  ;;  %v360_v29 = vpop.permute.xlu0 %359 }
  0xd8   : > { %v375_v30 = vsel %vm373_vm1, %v360_v29, %v362_v28  ;;  %v1597_v42 = vld [vmem:[#allocation2 + $0x8] sm:$0xff]  ;;  %v1598_v60 = vld [vmem:[#allocation2 + $0x10] sm:$0xff] }
  0xd9   : > { %389 = vst [vmem:[#allocation2 + $0x40] sm:$0xf] %v375_v30  ;;  %907 = vrot.lane.b32.xlu1 %v2886_v2, %s3906_s16  ;;  %857 = vrot.lane.b32.xlu0 %v2880_v1, %s3908_s12  ;;  %v1599_v57 = vld [vmem:[#allocation2 + $0x18] sm:$0xff] }
  0xdb   : > { %v412_v31 = vpop.permute.xlu1 %411  ;;  %v410_v32 = vpop.permute.xlu0 %409 }
  0xdc   : > { %v425_v33 = vsel %vm423_vm2, %v410_v32, %v412_v31 }
  0xdd   : > { %439 = vst [vmem:[#allocation2 + $0x40] sm:$0xf0] %v425_v33  ;;  %1007 = vrot.lane.b32.xlu1 %v2886_v2, %s3904_s26  ;;  %957 = vrot.lane.b32.xlu0 %v2880_v1, %s3902_s17 }
  0xdf   : > { %v408_v34 = vpop.permute.xlu1 %407  ;;  %v358_v35 = vpop.permute.xlu0 %357 }
  0xe0   : > { %v424_v36 = vsel %vm423_vm2, %v408_v34, %v410_v32  ;;  %v374_v37 = vsel %vm373_vm1, %v358_v35, %v360_v29 }
  0xe1   : > { %438 = vst [vmem:[#allocation2 + $0x38] sm:$0xf0] %v424_v36  ;;  %388 = vst [vmem:[#allocation2 + $0x38] sm:$0xf] %v374_v37  ;;  %865 = vrot.lane.b32.xlu1 %v2892_v4, %s3908_s12  ;;  %863 = vrot.lane.b32.xlu0 %v2896_v5, %s3908_s12  ;;  %s3912_s12 = smov 55  }
  0xe3   : > { %v3057_v38 = vpop.permute.xlu1 %365  ;;  %v364_v39 = vpop.permute.xlu0 %363 }
  0xe4   : > { %v376_v40 = vsel %vm373_vm1, %v362_v28, %v364_v39  ;;  %v377_v41 = vsel %vm373_vm1, %v364_v39, %v3057_v38  ;;  %v1604_v43 = vld [vmem:[#allocation2 + $0x40] sm:$0xff] }
  0xe5   : > { %390 = vst [vmem:[#allocation2 + $0x48] sm:$0xf] %v376_v40  ;;  %391 = vst [vmem:[#allocation2 + $0x50] sm:$0xf] %v377_v41  ;;  %915 = vrot.lane.b32.xlu1 %v2911_v10, %s3906_s16  ;;  %913 = vrot.lane.b32.xlu0 %v2877_v0, %s3906_s16  ;;  %v2305_v44 = vpack.c.bf16 %v1604_v43, %v1597_v42  ;;  %s3910_s16 = smov 56   ;;  %v3165_v42 = vcombine.high %v3107_v12, %v3107_v12 }
  0xe7   : > { %v3066_v45 = vpop.permute.xlu1 %415  ;;  %v414_v46 = vpop.permute.xlu0 %413  ;;  %2306 = vmatprep.subr.bf16.mxu0 %v2305_v44 }
  0xe8   : > { %v426_v47 = vsel %vm423_vm2, %v412_v31, %v414_v46  ;;  %v427_v48 = vsel %vm423_vm2, %v414_v46, %v3066_v45  ;;  %v1603_v50 = vld [vmem:[#allocation2 + $0x38] sm:$0xff] }
  0xe9   : > { %440 = vst [vmem:[#allocation2 + $0x48] sm:$0xf0] %v426_v47  ;;  %441 = vst [vmem:[#allocation2 + $0x50] sm:$0xf0] %v427_v48  ;;  %965 = vrot.lane.b32.xlu1 %v2892_v4, %s3902_s17  ;;  %963 = vrot.lane.b32.xlu0 %v2896_v5, %s3902_s17  ;;  %v2307_v51 = vpack.c.bf16 %v1603_v50, %v1596_v49  ;;  %s3916_s17 = smov 7  }
  0xeb   : > { %v3075_v52 = vpop.permute.xlu1 %461  ;;  %v460_v53 = vpop.permute.xlu0 %459  ;;  %2308 = vmatpush1.bf16.msra.mxu0 %v2307_v51 }
  0xec   : > { %v475_v54 = vsel %vm473_vm3, %v460_v53, %v3075_v52 }
  0xed   : > { %489 = vst [vmem:[#allocation2 + $0x78] sm:$0xf] %v475_v54  ;;  %1015 = vrot.lane.b32.xlu1 %v2911_v10, %s3904_s26  ;;  %1013 = vrot.lane.b32.xlu0 %v2877_v0, %s3904_s26  ;;  %s3914_s26 = smov 6  }
  0xef   : > { %v3083_v55 = vpop.permute.xlu1 %511  ;;  %v510_v56 = vpop.permute.xlu0 %509 }
  0xf0   : > { %v525_v58 = vsel %vm523_vm4, %v510_v56, %v3083_v55  ;;  %v1606_v59 = vld [vmem:[#allocation2 + $0x50] sm:$0xff]  ;;  %v1605_v61 = vld [vmem:[#allocation2 + $0x48] sm:$0xff] }
  0xf1   : > { %539 = vst [vmem:[#allocation2 + $0x78] sm:$0xf0] %v525_v58  ;;  %1061 = vrot.lane.b32.xlu1 %v2877_v0, %s3916_s17  ;;  %1059 = vrot.lane.b32.xlu0 %v2900_v6, %s3916_s17  ;;  %v2335_v62 = vpack.c.bf16 %v1606_v59, %v1599_v57  ;;  %v2337_v63 = vpack.c.bf16 %v1605_v61, %v1598_v60 }
  0xf2   : > { %v3104_v6 = vcombine.high %v3092_v3, %v3092_v3 }
  0xf3   : > { %v3094_v7 = vpop.permute.xlu1 %561  ;;  %v560_v8 = vpop.permute.xlu0 %559  ;;  %2336 = vmatprep.subr.bf16.mxu1 %v2335_v62 }
  0xf4   : > { %v575_v11 = vsel %vm573_vm5, %v560_v8, %v3094_v7  ;;  %2338 = vmatpush1.bf16.msra.mxu1 %v2337_v63 }
  0xf5   : > { %589 = vst [vmem:[#allocation2 + $0xb0] sm:$0xf] %v575_v11  ;;  %1111 = vrot.lane.b32.xlu1 %v2907_v9, %s3914_s26  ;;  %1109 = vrot.lane.b32.xlu0 %v2880_v1, %s3914_s26  ;;  %v3119_v9 = vcombine.low %v3107_v12, %v3107_v12 }
  0xf7   : > { %v3109_v13 = vpop.permute.xlu1 %611  ;;  %v610_v14 = vpop.permute.xlu0 %609 }
  0xf8   : > { %v625_v15 = vsel %vm623_vm6, %v610_v14, %v3109_v13  ;;  %v1611_v24 = vld [vmem:[#allocation2 + $0x78] sm:$0xff] }
  0xf9   : > { %639 = vst [vmem:[#allocation2 + $0xb0] sm:$0xf0] %v625_v15  ;;  %1161 = vrot.lane.b32.xlu1 %v3107_v12, %s3910_s16  ;;  %1159 = vrot.lane.b32.xlu0 %v3104_v6, %s3910_s16 }
  0xfb   : > { %v508_v16 = vpop.permute.xlu1 %507  ;;  %v458_v17 = vpop.permute.xlu0 %457 }
  0xfc   : > { %v524_v18 = vsel %vm523_vm4, %v508_v16, %v510_v56  ;;  %v474_v19 = vsel %vm473_vm3, %v458_v17, %v460_v53 }
  0xfd   : > { %538 = vst [vmem:[#allocation2 + $0x70] sm:$0xf0] %v524_v18  ;;  %488 = vst [vmem:[#allocation2 + $0x70] sm:$0xf] %v474_v19  ;;  %1211 = vrot.lane.b32.xlu1 %v3119_v9, %s3912_s12  ;;  %1209 = vrot.lane.b32.xlu0 %v3092_v3, %s3912_s12 }
  0xff   : > { %v608_v20 = vpop.permute.xlu1 %607  ;;  %v558_v21 = vpop.permute.xlu0 %557 }
 0x100   : > { %v624_v22 = vsel %vm623_vm6, %v608_v20, %v610_v14  ;;  %v574_v23 = vsel %vm573_vm5, %v558_v21, %v560_v8  ;;  %v1618_v25 = vld [vmem:[#allocation2 + $0xb0] sm:$0xff] }
 0x101   : > { %638 = vst [vmem:[#allocation2 + $0xa8] sm:$0xf0] %v624_v22  ;;  %588 = vst [vmem:[#allocation2 + $0xa8] sm:$0xf] %v574_v23  ;;  %1107 = vrot.lane.b32.xlu1 %v2886_v2, %s3914_s26  ;;  %1057 = vrot.lane.b32.xlu0 %v2880_v1, %s3916_s17  ;;  %v2309_v27 = vpack.c.bf16 %v1618_v25, %v1611_v24 }
 0x103   : > { %v3137_v28 = vpop.permute.xlu1 %465  ;;  %v464_v29 = vpop.permute.xlu0 %463  ;;  %2310 = vmatprep.subr.bf16.mxu0 %v2309_v27 }
 0x104   : > { %v476_v30 = vsel %vm473_vm3, %v3075_v52, %v464_v29  ;;  %v477_v31 = vsel %vm473_vm3, %v464_v29, %v3137_v28  ;;  %v1610_v34 = vld [vmem:[#allocation2 + $0x70] sm:$0xff] }
 0x105   : > { %490 = vst [vmem:[#allocation2 + $0x80] sm:$0xf] %v476_v30  ;;  %491 = vst [vmem:[#allocation2 + $0x88] sm:$0xf] %v477_v31  ;;  %1207 = vrot.lane.b32.xlu1 %v3131_v26, %s3912_s12  ;;  %1157 = vrot.lane.b32.xlu0 %v3092_v3, %s3910_s16 }
 0x107   : > { %v3147_v1 = vpop.permute.xlu1 %515  ;;  %v514_v2 = vpop.permute.xlu0 %513 }
 0x108   : > { %v526_v32 = vsel %vm523_vm4, %v3083_v55, %v514_v2  ;;  %v527_v33 = vsel %vm523_vm4, %v514_v2, %v3147_v1  ;;  %v1617_v35 = vld [vmem:[#allocation2 + $0xa8] sm:$0xff] }
 0x109   : > { %540 = vst [vmem:[#allocation2 + $0x80] sm:$0xf0] %v526_v32  ;;  %541 = vst [vmem:[#allocation2 + $0x88] sm:$0xf0] %v527_v33  ;;  %1065 = vrot.lane.b32.xlu1 %v2892_v4, %s3916_s17  ;;  %1063 = vrot.lane.b32.xlu0 %v2896_v5, %s3916_s17  ;;  %v2311_v36 = vpack.c.bf16 %v1617_v35, %v1610_v34  ;;  %v3172_v5 = vld [vmem:[%s2866_s23 + $0x14] sm:$0xff]  ;;  %s3920_s17 = smov 44  }
 0x10b   : > { %v3157_v37 = vpop.permute.xlu1 %565  ;;  %v564_v39 = vpop.permute.xlu0 %563  ;;  %2312 = vmatpush1.bf16.msra.mxu0 %v2311_v36 }
 0x10c   : > { %v576_v40 = vsel %vm573_vm5, %v3094_v7, %v564_v39  ;;  %v577_v41 = vsel %vm573_vm5, %v564_v39, %v3157_v37 }
 0x10d   : > { %590 = vst [vmem:[#allocation2 + $0xb8] sm:$0xf] %v576_v40  ;;  %591 = vst [vmem:[#allocation2 + $0xc0] sm:$0xf] %v577_v41  ;;  %1115 = vrot.lane.b32.xlu1 %v2911_v10, %s3914_s26  ;;  %1113 = vrot.lane.b32.xlu0 %v2877_v0, %s3914_s26  ;;  %v3186_v0 = vcombine.low %v3172_v5, %v3172_v5  ;;  %s3918_s26 = smov 45  }
 0x10f   : > { %v3174_v43 = vpop.permute.xlu1 %615  ;;  %v614_v44 = vpop.permute.xlu0 %613 }
 0x110   : > { %v626_v46 = vsel %vm623_vm6, %v3109_v13, %v614_v44  ;;  %v627_v47 = vsel %vm623_vm6, %v614_v44, %v3174_v43  ;;  %v1613_v52 = vld [vmem:[#allocation2 + $0x88] sm:$0xff]  ;;  %v1612_v55 = vld [vmem:[#allocation2 + $0x80] sm:$0xff] }
 0x111   : > { %640 = vst [vmem:[#allocation2 + $0xb8] sm:$0xf0] %v626_v46  ;;  %641 = vst [vmem:[#allocation2 + $0xc0] sm:$0xf0] %v627_v47  ;;  %1165 = vrot.lane.b32.xlu1 %v3172_v5, %s3910_s16  ;;  %1163 = vrot.lane.b32.xlu0 %v3165_v42, %s3910_s16  ;;  %s2679_s16 = smov 54  }
 0x113   : > { %v662_v10 = vpop.permute.xlu1 %661  ;;  %v660_v48 = vpop.permute.xlu0 %659 }
 0x114   : > { %v675_v49 = vsel %vm673_vm7, %v660_v48, %v662_v10 }
 0x115   : > { %689 = vst [vmem:[#allocation2 + $0xe8] sm:$0xf] %v675_v49  ;;  %1215 = vrot.lane.b32.xlu1 %v3186_v0, %s3912_s12  ;;  %1213 = vrot.lane.b32.xlu0 %v3107_v12, %s3912_s12  ;;  %s3922_s12 = smov 46  }
 0x117   : > { %v3193_v50 = vpop.permute.xlu1 %711  ;;  %v710_v51 = vpop.permute.xlu0 %709 }
 0x118   : > { %v725_v53 = vsel %vm723_vm8, %v710_v51, %v3193_v50  ;;  %v1620_v54 = vld [vmem:[#allocation2 + $0xc0] sm:$0xff]  ;;  %v1619_v56 = vld [vmem:[#allocation2 + $0xb8] sm:$0xff] }
 0x119   : > { %739 = vst [vmem:[#allocation2 + $0xe8] sm:$0xf0] %v725_v53  ;;  %1261 = vrot.lane.b32.xlu1 %v3107_v12, %s2679_s16  ;;  %1259 = vrot.lane.b32.xlu0 %v3104_v6, %s2679_s16  ;;  %v2339_v57 = vpack.c.bf16 %v1620_v54, %v1613_v52  ;;  %v2341_v58 = vpack.c.bf16 %v1619_v56, %v1612_v55 }
 0x11b   : > { %v762_v59 = vpop.permute.xlu1 %761  ;;  %v760_v60 = vpop.permute.xlu0 %759  ;;  %2340 = vmatprep.subr.bf16.mxu1 %v2339_v57 }
 0x11c   : > { %v775_v61 = vsel %vm773_vm9, %v760_v60, %v762_v59  ;;  %2342 = vmatpush1.bf16.msra.mxu1 %v2341_v58 }
 0x11d   : > { %789 = vst [vmem:[#allocation2 + $0x120] sm:$0xf] %v775_v61  ;;  %1311 = vrot.lane.b32.xlu1 %v3119_v9, %s3922_s12  ;;  %1309 = vrot.lane.b32.xlu0 %v3092_v3, %s3922_s12 }
 0x11f   : > { %v812_v62 = vpop.permute.xlu1 %811  ;;  %v810_v63 = vpop.permute.xlu0 %809 }
 0x120   : > { %v825_v7 = vsel %vm823_vm10, %v810_v63, %v812_v62  ;;  %v1625_v19 = vld [vmem:[#allocation2 + $0xe8] sm:$0xff] }
 0x121   : > { %839 = vst [vmem:[#allocation2 + $0x120] sm:$0xf0] %v825_v7  ;;  %1361 = vrot.lane.b32.xlu1 %v3107_v12, %s3918_s26  ;;  %1359 = vrot.lane.b32.xlu0 %v3104_v6, %s3918_s26 }
 0x123   : > { %v708_v8 = vpop.permute.xlu1 %707  ;;  %v658_v11 = vpop.permute.xlu0 %657 }
 0x124   : > { %v724_v13 = vsel %vm723_vm8, %v708_v8, %v710_v51  ;;  %v674_v14 = vsel %vm673_vm7, %v658_v11, %v660_v48 }
 0x125   : > { %738 = vst [vmem:[#allocation2 + $0xe0] sm:$0xf0] %v724_v13  ;;  %688 = vst [vmem:[#allocation2 + $0xe0] sm:$0xf] %v674_v14  ;;  %1411 = vrot.lane.b32.xlu1 %v3119_v9, %s3920_s17  ;;  %1409 = vrot.lane.b32.xlu0 %v3092_v3, %s3920_s17  ;;  %v3296_v13 = vcombine.high %v2892_v4, %v2892_v4 }
 0x127   : > { %v808_v15 = vpop.permute.xlu1 %807  ;;  %v758_v16 = vpop.permute.xlu0 %757 }
 0x128   : > { %v824_v17 = vsel %vm823_vm10, %v808_v15, %v810_v63  ;;  %v774_v18 = vsel %vm773_vm9, %v758_v16, %v760_v60  ;;  %v1632_v20 = vld [vmem:[#allocation2 + $0x120] sm:$0xff] }
 0x129   : > { %838 = vst [vmem:[#allocation2 + $0x118] sm:$0xf0] %v824_v17  ;;  %788 = vst [vmem:[#allocation2 + $0x118] sm:$0xf] %v774_v18  ;;  %1307 = vrot.lane.b32.xlu1 %v3131_v26, %s3922_s12  ;;  %1257 = vrot.lane.b32.xlu0 %v3092_v3, %s2679_s16  ;;  %v2313_v21 = vpack.c.bf16 %v1632_v20, %v1625_v19  ;;  %v3309_v19 = vld [vmem:[%s2866_s23 + $0x18] sm:$0xff] }
 0x12b   : > { %v3223_v22 = vpop.permute.xlu1 %665  ;;  %v664_v23 = vpop.permute.xlu0 %663  ;;  %2314 = vmatprep.subr.bf16.mxu0 %v2313_v21 }
 0x12c   : > { %v676_v24 = vsel %vm673_vm7, %v662_v10, %v664_v23  ;;  %v677_v25 = vsel %vm673_vm7, %v664_v23, %v3223_v22  ;;  %v1624_v2 = vld [vmem:[#allocation2 + $0xe0] sm:$0xff] }
 0x12d   : > { %690 = vst [vmem:[#allocation2 + $0xf0] sm:$0xf] %v676_v24  ;;  %691 = vst [vmem:[#allocation2 + $0xf8] sm:$0xf] %v677_v25  ;;  %1407 = vrot.lane.b32.xlu1 %v3131_v26, %s3920_s17  ;;  %1357 = vrot.lane.b32.xlu0 %v3092_v3, %s3918_s26  ;;  %v2686_v25 = vmov 0.0  }
 0x12e   : > { %1783 = vmatprep.mubr.f32.mxu0 %v2686_v25  ;;  %1854 = vmatprep.mubr.f32.mxu1 %v2686_v25 }
 0x12f   : > { %v3232_v27 = vpop.permute.xlu1 %715  ;;  %v714_v29 = vpop.permute.xlu0 %713 }
 0x130   : > { %v726_v30 = vsel %vm723_vm8, %v3193_v50, %v714_v29  ;;  %v727_v31 = vsel %vm723_vm8, %v714_v29, %v3232_v27  ;;  %v1631_v32 = vld [vmem:[#allocation2 + $0x118] sm:$0xff] }
 0x131   : > { %740 = vst [vmem:[#allocation2 + $0xf0] sm:$0xf0] %v726_v30  ;;  %741 = vst [vmem:[#allocation2 + $0xf8] sm:$0xf0] %v727_v31  ;;  %1265 = vrot.lane.b32.xlu1 %v3172_v5, %s2679_s16  ;;  %1263 = vrot.lane.b32.xlu0 %v3165_v42, %s2679_s16  ;;  %v2315_v33 = vpack.c.bf16 %v1631_v32, %v1624_v2 }
 0x133   : > { %v3242_v34 = vpop.permute.xlu1 %765  ;;  %v764_v35 = vpop.permute.xlu0 %763  ;;  %2316 = vmatpush1.bf16.msra.mxu0 %v2315_v33 }
 0x134   : > { %v776_v36 = vsel %vm773_vm9, %v762_v59, %v764_v35  ;;  %v777_v39 = vsel %vm773_vm9, %v764_v35, %v3242_v34 }
 0x135   : > { %790 = vst [vmem:[#allocation2 + $0x128] sm:$0xf] %v776_v36  ;;  %791 = vst [vmem:[#allocation2 + $0x130] sm:$0xf] %v777_v39  ;;  %1315 = vrot.lane.b32.xlu1 %v3186_v0, %s3922_s12  ;;  %1313 = vrot.lane.b32.xlu0 %v3107_v12, %s3922_s12  ;;  %s2685_s12 = smov 34  }
 0x137   : > { %v3251_v40 = vpop.permute.xlu1 %815  ;;  %v814_v41 = vpop.permute.xlu0 %813 }
 0x138   : > { %v826_v44 = vsel %vm823_vm10, %v812_v62, %v814_v41  ;;  %v827_v46 = vsel %vm823_vm10, %v814_v41, %v3251_v40  ;;  %v1627_v51 = vld [vmem:[#allocation2 + $0xf8] sm:$0xff]  ;;  %v1626_v54 = vld [vmem:[#allocation2 + $0xf0] sm:$0xff] }
 0x139   : > { %840 = vst [vmem:[#allocation2 + $0x128] sm:$0xf0] %v826_v44  ;;  %841 = vst [vmem:[#allocation2 + $0x130] sm:$0xf0] %v827_v46  ;;  %1365 = vrot.lane.b32.xlu1 %v3172_v5, %s3918_s26  ;;  %1363 = vrot.lane.b32.xlu0 %v3165_v42, %s3918_s26  ;;  %s2683_s26 = smov 36  }
 0x13b   : > { %v3260_v47 = vpop.permute.xlu1 %861  ;;  %v860_v10 = vpop.permute.xlu0 %859 }
 0x13c   : > { %v875_v48 = vsel %vm3935_vm11, %v860_v10, %v3260_v47 }
 0x13d   : > { %889 = vst [vmem:[#allocation2 + $0x158] sm:$0xf] %v875_v48  ;;  %1415 = vrot.lane.b32.xlu1 %v3186_v0, %s3920_s17  ;;  %1413 = vrot.lane.b32.xlu0 %v3107_v12, %s3920_s17  ;;  %s2684_s17 = smov 35  }
 0x13f   : > { %v3268_v49 = vpop.permute.xlu1 %911  ;;  %v910_v50 = vpop.permute.xlu0 %909 }
 0x140   : > { %v925_v52 = vsel %vm3934_vm12, %v910_v50, %v3268_v49  ;;  %v1634_v53 = vld [vmem:[#allocation2 + $0x130] sm:$0xff]  ;;  %v1633_v55 = vld [vmem:[#allocation2 + $0x128] sm:$0xff] }
 0x141   : > { %939 = vst [vmem:[#allocation2 + $0x158] sm:$0xf0] %v925_v52  ;;  %1461 = vrot.lane.b32.xlu1 %v3107_v12, %s2683_s26  ;;  %1459 = vrot.lane.b32.xlu0 %v3104_v6, %s2683_s26  ;;  %v2343_v56 = vpack.c.bf16 %v1634_v53, %v1627_v51  ;;  %v2345_v57 = vpack.c.bf16 %v1633_v55, %v1626_v54 }
 0x143   : > { %v3276_v58 = vpop.permute.xlu1 %961  ;;  %v960_v59 = vpop.permute.xlu0 %959  ;;  %2344 = vmatprep.subr.bf16.mxu1 %v2343_v56 }
 0x144   : > { %v975_v60 = vsel %vm3925_vm13, %v960_v59, %v3276_v58  ;;  %2346 = vmatpush1.bf16.msra.mxu1 %v2345_v57 }
 0x145   : > { %989 = vst [vmem:[#allocation2 + $0x190] sm:$0xf] %v975_v60  ;;  %1511 = vrot.lane.b32.xlu1 %v3119_v9, %s2684_s17  ;;  %1509 = vrot.lane.b32.xlu0 %v3092_v3, %s2684_s17 }
 0x147   : > { %v3284_v61 = vpop.permute.xlu1 %1011  ;;  %v1010_v62 = vpop.permute.xlu0 %1009 }
 0x148   : > { %v1025_v63 = vsel %vm3924_vm14, %v1010_v62, %v3284_v61  ;;  %v1639_v17 = vld [vmem:[#allocation2 + $0x158] sm:$0xff] }
 0x149   : > { %1039 = vst [vmem:[#allocation2 + $0x190] sm:$0xf0] %v1025_v63  ;;  %1561 = vrot.lane.b32.xlu1 %v3107_v12, %s2685_s12  ;;  %1559 = vrot.lane.b32.xlu0 %v3104_v6, %s2685_s12 }
 0x14b   : > { %v908_v7 = vpop.permute.xlu1 %907  ;;  %v858_v9 = vpop.permute.xlu0 %857 }
 0x14c   : > { %v924_v8 = vsel %vm3934_vm12, %v908_v7, %v910_v50  ;;  %v874_v11 = vsel %vm3935_vm11, %v858_v9, %v860_v10  ;;  %v3375_v7 = vcombine.high %v3309_v19, %v3309_v19 }
 0x14d   : > { %938 = vst [vmem:[#allocation2 + $0x150] sm:$0xf0] %v924_v8  ;;  %888 = vst [vmem:[#allocation2 + $0x150] sm:$0xf] %v874_v11  ;;  %1507 = vrot.lane.b32.xlu1 %v3131_v26, %s2684_s17  ;;  %1457 = vrot.lane.b32.xlu0 %v3092_v3, %s2683_s26 }
 0x14f   : > { %v1008_v6 = vpop.permute.xlu1 %1007  ;;  %v958_v14 = vpop.permute.xlu0 %957 }
 0x150   : > { %v1024_v15 = vsel %vm3924_vm14, %v1008_v6, %v1010_v62  ;;  %v974_v16 = vsel %vm3925_vm13, %v958_v14, %v960_v59  ;;  %v1646_v18 = vld [vmem:[#allocation2 + $0x190] sm:$0xff] }
 0x151   : > { %1038 = vst [vmem:[#allocation2 + $0x188] sm:$0xf0] %v1024_v15  ;;  %988 = vst [vmem:[#allocation2 + $0x188] sm:$0xf] %v974_v16  ;;  %367 = vrot.lane.b32.xlu1 %v3296_v13, %s2661_s24  ;;  %1557 = vrot.lane.b32.xlu0 %v3092_v3, %s2685_s12  ;;  %v2317_v26 = vpack.c.bf16 %v1646_v18, %v1639_v17  ;;  %v3323_v3 = vcombine.low %v3309_v19, %v3309_v19 }
 0x153   : > { %v3311_v20 = vpop.permute.xlu1 %865  ;;  %v864_v21 = vpop.permute.xlu0 %863  ;;  %2318 = vmatprep.subr.bf16.mxu0 %v2317_v26 }
 0x154   : > { %v876_v23 = vsel %vm3935_vm11, %v3260_v47, %v864_v21  ;;  %v877_v24 = vsel %vm3935_vm11, %v864_v21, %v3311_v20  ;;  %v1638_v32 = vld [vmem:[#allocation2 + $0x150] sm:$0xff] }
 0x155   : > { %890 = vst [vmem:[#allocation2 + $0x160] sm:$0xf] %v876_v23  ;;  %891 = vst [vmem:[#allocation2 + $0x168] sm:$0xf] %v877_v24  ;;  %417 = vrot.lane.b32.xlu1 %v2892_v4, %s2662_s11  ;;  %369 = vrot.lane.b32.xlu0 %v3309_v19, %s2661_s24 }
 0x157   : > { %v3327_v29 = vpop.permute.xlu1 %915  ;;  %v914_v30 = vpop.permute.xlu0 %913 }
 0x158   : > { %v926_v31 = vsel %vm3934_vm12, %v3268_v49, %v914_v30  ;;  %v927_v2 = vsel %vm3934_vm12, %v914_v30, %v3327_v29  ;;  %v1645_v33 = vld [vmem:[#allocation2 + $0x188] sm:$0xff]  ;;  %vm2687_vm12 = vmmov 1  }
 0x159   : > { %940 = vst [vmem:[#allocation2 + $0x160] sm:$0xf0] %v926_v31  ;;  %941 = vst [vmem:[#allocation2 + $0x168] sm:$0xf0] %v927_v2  ;;  %1463 = vrot.lane.b32.xlu1 %v3165_v42, %s2683_s26  ;;  %419 = vrot.lane.b32.xlu0 %v3323_v3, %s2662_s11  ;;  %v2319_v35 = vpack.c.bf16 %v1645_v33, %v1638_v32  ;;  %v3399_v31 = vld [vmem:[%s2866_s23 + $0x10] sm:$0xff] }
 0x15b   : > { %v3337_v36 = vpop.permute.xlu1 %965  ;;  %v964_v39 = vpop.permute.xlu0 %963  ;;  %2320 = vmatpush1.bf16.msra.mxu0 %v2319_v35 }
 0x15c   : > { %v976_v41 = vsel %vm3925_vm13, %v3276_v58, %v964_v39  ;;  %v977_v44 = vsel %vm3925_vm13, %v964_v39, %v3337_v36  ;;  %vm3927_vm13 = vcmask 449536  }
 0x15d   : > { %990 = vst [vmem:[#allocation2 + $0x198] sm:$0xf] %v976_v41  ;;  %991 = vst [vmem:[#allocation2 + $0x1a0] sm:$0xf] %v977_v44  ;;  %1513 = vrot.lane.b32.xlu1 %v3107_v12, %s2684_s17  ;;  %1465 = vrot.lane.b32.xlu0 %v3172_v5, %s2683_s26 }
 0x15f   : > { %v3347_v46 = vpop.permute.xlu1 %1015  ;;  %v1014_v47 = vpop.permute.xlu0 %1013 }
 0x160   : > { %v1026_v10 = vsel %vm3924_vm14, %v3284_v61, %v1014_v47  ;;  %v1027_v48 = vsel %vm3924_vm14, %v1014_v47, %v3347_v46  ;;  %v1641_v53 = vld [vmem:[#allocation2 + $0x168] sm:$0xff]  ;;  %vm3926_vm14 = vcmask 457728  }
 0x161   : > { %1040 = vst [vmem:[#allocation2 + $0x198] sm:$0xf0] %v1026_v10  ;;  %1041 = vst [vmem:[#allocation2 + $0x1a0] sm:$0xf0] %v1027_v48  ;;  %1563 = vrot.lane.b32.xlu1 %v3165_v42, %s2685_s12  ;;  %1515 = vrot.lane.b32.xlu0 %v3186_v0, %s2684_s17  ;;  %v1640_v0 = vld [vmem:[#allocation2 + $0x160] sm:$0xff] }
 0x163   : > { %v1062_v12 = vpop.permute.xlu1 %1061  ;;  %v1060_v49 = vpop.permute.xlu0 %1059 }
 0x164   : > { %v1075_v50 = vsel %vm3929_vm15, %v1060_v49, %v1062_v12 }
 0x165   : > { %1089 = vst [vmem:[#allocation2 + $0x1c8] sm:$0xf] %v1075_v50  ;;  %467 = vrot.lane.b32.xlu1 %v3296_v13, %s2663_s8  ;;  %1565 = vrot.lane.b32.xlu0 %v3172_v5, %s2685_s12 }
 0x167   : > { %v1112_v51 = vpop.permute.xlu1 %1111  ;;  %v1110_v52 = vpop.permute.xlu0 %1109 }
 0x168   : > { %v1125_v42 = vsel %vm3928_vm0, %v1110_v52, %v1112_v51  ;;  %v1648_v54 = vld [vmem:[#allocation2 + $0x1a0] sm:$0xff]  ;;  %v1647_v55 = vld [vmem:[#allocation2 + $0x198] sm:$0xff] }
 0x169   : > { %1139 = vst [vmem:[#allocation2 + $0x1c8] sm:$0xf0] %v1125_v42  ;;  %517 = vrot.lane.b32.xlu1 %v2892_v4, %s2664_s13  ;;  %469 = vrot.lane.b32.xlu0 %v3309_v19, %s2663_s8  ;;  %v2347_v56 = vpack.c.bf16 %v1648_v54, %v1641_v53  ;;  %v2349_v57 = vpack.c.bf16 %v1647_v55, %v1640_v0 }
 0x16b   : > { %v1162_v58 = vpop.permute.xlu1 %1161  ;;  %v1160_v59 = vpop.permute.xlu0 %1159  ;;  %2348 = vmatprep.subr.bf16.mxu1 %v2347_v56 }
 0x16c   : > { %v1175_v60 = vsel %vm3926_vm14, %v1160_v59, %v1162_v58  ;;  %2350 = vmatpush1.bf16.msra.mxu1 %v2349_v57 }
 0x16d   : > { %1189 = vst [vmem:[#allocation2 + $0x200] sm:$0xf] %v1175_v60  ;;  %567 = vrot.lane.b32.xlu1 %v3296_v13, %s2665_s14  ;;  %519 = vrot.lane.b32.xlu0 %v3323_v3, %s2664_s13 }
 0x16f   : > { %v1212_v61 = vpop.permute.xlu1 %1211  ;;  %v1210_v62 = vpop.permute.xlu0 %1209 }
 0x170   : > { %v1225_v63 = vsel %vm3927_vm13, %v1210_v62, %v1212_v61  ;;  %v1653_v17 = vld [vmem:[#allocation2 + $0x1c8] sm:$0xff] }
 0x171   : > { %1239 = vst [vmem:[#allocation2 + $0x200] sm:$0xf0] %v1225_v63  ;;  %617 = vrot.lane.b32.xlu1 %v2892_v4, %s2666_s10  ;;  %569 = vrot.lane.b32.xlu0 %v3309_v19, %s2665_s14 }
 0x173   : > { %v1108_v9 = vpop.permute.xlu1 %1107  ;;  %v1058_v8 = vpop.permute.xlu0 %1057 }
 0x174   : > { %v1124_v11 = vsel %vm3928_vm0, %v1108_v9, %v1110_v52  ;;  %v1074_v6 = vsel %vm3929_vm15, %v1058_v8, %v1060_v49 }
 0x175   : > { %1138 = vst [vmem:[#allocation2 + $0x1c0] sm:$0xf0] %v1124_v11  ;;  %1088 = vst [vmem:[#allocation2 + $0x1c0] sm:$0xf] %v1074_v6  ;;  %371 = vrot.lane.b32.xlu1 %v3375_v7, %s2661_s24  ;;  %619 = vrot.lane.b32.xlu0 %v3323_v3, %s2666_s10  ;;  %s3951_s24 = smov 18  }
 0x177   : > { %v1208_v14 = vpop.permute.xlu1 %1207  ;;  %v1158_v15 = vpop.permute.xlu0 %1157 }
 0x178   : > { %v1224_v4 = vsel %vm3927_vm13, %v1208_v14, %v1210_v62  ;;  %v1174_v16 = vsel %vm3926_vm14, %v1158_v15, %v1160_v59  ;;  %v1660_v18 = vld [vmem:[#allocation2 + $0x200] sm:$0xff] }
 0x179   : > { %1238 = vst [vmem:[#allocation2 + $0x1f8] sm:$0xf0] %v1224_v4  ;;  %1188 = vst [vmem:[#allocation2 + $0x1f8] sm:$0xf] %v1174_v16  ;;  %667 = vrot.lane.b32.xlu1 %v3296_v13, %s2667_s28  ;;  %421 = vrot.lane.b32.xlu0 %v3309_v19, %s2662_s11  ;;  %v2321_v26 = vpack.c.bf16 %v1660_v18, %v1653_v17  ;;  %s3952_s11 = smov 17  }
 0x17b   : > { %v3393_v21 = vpop.permute.xlu1 %1065  ;;  %v1064_v23 = vpop.permute.xlu0 %1063  ;;  %2322 = vmatprep.subr.bf16.mxu0 %v2321_v26 }
 0x17c   : > { %v1076_v24 = vsel %vm3929_vm15, %v1062_v12, %v1064_v23  ;;  %v1077_v30 = vsel %vm3929_vm15, %v1064_v23, %v3393_v21  ;;  %v1652_v39 = vld [vmem:[#allocation2 + $0x1c0] sm:$0xff]  ;;  %vm3931_vm15 = vcmask 359424  }
 0x17d   : > { %1090 = vst [vmem:[#allocation2 + $0x1d0] sm:$0xf] %v1076_v24  ;;  %1091 = vst [vmem:[#allocation2 + $0x1d8] sm:$0xf] %v1077_v30  ;;  %717 = vrot.lane.b32.xlu1 %v3399_v31, %s2668_s6  ;;  %669 = vrot.lane.b32.xlu0 %v3309_v19, %s2667_s28 }
 0x17f   : > { %v3405_v2 = vpop.permute.xlu1 %1115  ;;  %v1114_v32 = vpop.permute.xlu0 %1113 }
 0x180   : > { %v1126_v33 = vsel %vm3928_vm0, %v1112_v51, %v1114_v32  ;;  %v1127_v35 = vsel %vm3928_vm0, %v1114_v32, %v3405_v2  ;;  %v1659_v41 = vld [vmem:[#allocation2 + $0x1f8] sm:$0xff]  ;;  %vm3930_vm0 = vcmask 367616  }
 0x181   : > { %1140 = vst [vmem:[#allocation2 + $0x1d0] sm:$0xf0] %v1126_v33  ;;  %1141 = vst [vmem:[#allocation2 + $0x1d8] sm:$0xf0] %v1127_v35  ;;  %767 = vrot.lane.b32.xlu1 %v3296_v13, %s2669_s9  ;;  %719 = vrot.lane.b32.xlu0 %v3323_v3, %s2668_s6  ;;  %v2323_v44 = vpack.c.bf16 %v1659_v41, %v1652_v39 }
 0x183   : > { %v3414_v47 = vpop.permute.xlu1 %1165  ;;  %v1164_v10 = vpop.permute.xlu0 %1163  ;;  %2324 = vmatpush1.bf16.msra.mxu0 %v2323_v44 }
 0x184   : > { %v1176_v48 = vsel %vm3926_vm14, %v1162_v58, %v1164_v10  ;;  %v1177_v12 = vsel %vm3926_vm14, %v1164_v10, %v3414_v47  ;;  %vm3933_vm14 = vcmask 441344  }
 0x185   : > { %1190 = vst [vmem:[#allocation2 + $0x208] sm:$0xf] %v1176_v48  ;;  %1191 = vst [vmem:[#allocation2 + $0x210] sm:$0xf] %v1177_v12  ;;  %817 = vrot.lane.b32.xlu1 %v3399_v31, %s2670_s7  ;;  %769 = vrot.lane.b32.xlu0 %v3309_v19, %s2669_s9 }
 0x187   : > { %v3423_v49 = vpop.permute.xlu1 %1215  ;;  %v1214_v50 = vpop.permute.xlu0 %1213 }
 0x188   : > { %v1226_v51 = vsel %vm3927_vm13, %v1212_v61, %v1214_v50  ;;  %v1227_v52 = vsel %vm3927_vm13, %v1214_v50, %v3423_v49  ;;  %vm3932_vm13 = vcmask 375808   ;;  %v1655_v56 = vld [vmem:[#allocation2 + $0x1d8] sm:$0xff]  ;;  %v1654_v59 = vld [vmem:[#allocation2 + $0x1d0] sm:$0xff] }
 0x189   : > { %1240 = vst [vmem:[#allocation2 + $0x208] sm:$0xf0] %v1226_v51  ;;  %1241 = vst [vmem:[#allocation2 + $0x210] sm:$0xf0] %v1227_v52  ;;  %471 = vrot.lane.b32.xlu1 %v3375_v7, %s2663_s8  ;;  %819 = vrot.lane.b32.xlu0 %v3323_v3, %s2670_s7  ;;  %s3953_s8 = smov 16  }
 0x18b   : > { %v1262_v53 = vpop.permute.xlu1 %1261  ;;  %v1260_v42 = vpop.permute.xlu0 %1259 }
 0x18c   : > { %v1275_v54 = vsel %vm3933_vm14, %v1260_v42, %v1262_v53 }
 0x18d   : > { %1289 = vst [vmem:[#allocation2 + $0x238] sm:$0xf] %v1275_v54  ;;  %571 = vrot.lane.b32.xlu1 %v3375_v7, %s2665_s14  ;;  %521 = vrot.lane.b32.xlu0 %v3309_v19, %s2664_s13  ;;  %s3954_s13 = smov 8   ;;  %s3955_s14 = smov 7  }
 0x18f   : > { %v1312_v0 = vpop.permute.xlu1 %1311  ;;  %v1310_v55 = vpop.permute.xlu0 %1309 }
 0x190   : > { %v1325_v57 = vsel %vm3932_vm13, %v1310_v55, %v1312_v0  ;;  %v1662_v58 = vld [vmem:[#allocation2 + $0x210] sm:$0xff]  ;;  %v1661_v60 = vld [vmem:[#allocation2 + $0x208] sm:$0xff] }
 0x191   : > { %1339 = vst [vmem:[#allocation2 + $0x238] sm:$0xf0] %v1325_v57  ;;  %867 = vrot.lane.b32.xlu1 %v3296_v13, %s3951_s24  ;;  %621 = vrot.lane.b32.xlu0 %v3309_v19, %s2666_s10  ;;  %v2351_v61 = vpack.c.bf16 %v1662_v58, %v1655_v56  ;;  %v2353_v62 = vpack.c.bf16 %v1661_v60, %v1654_v59  ;;  %s3956_s10 = smov 6  }
 0x192   : > { %v3489_v56 = vcombine.high %v3172_v5, %v3172_v5 }
 0x193   : > { %v1362_v63 = vpop.permute.xlu1 %1361  ;;  %v1360_v9 = vpop.permute.xlu0 %1359  ;;  %2352 = vmatprep.subr.bf16.mxu1 %v2351_v61 }
 0x194   : > { %v1375_v8 = vsel %vm3930_vm0, %v1360_v9, %v1362_v63  ;;  %2354 = vmatpush1.bf16.msra.mxu1 %v2353_v62 }
 0x195   : > { %1389 = vst [vmem:[#allocation2 + $0x270] sm:$0xf] %v1375_v8  ;;  %917 = vrot.lane.b32.xlu1 %v3399_v31, %s3952_s11  ;;  %869 = vrot.lane.b32.xlu0 %v3309_v19, %s3951_s24 }
 0x197   : > { %v1412_v11 = vpop.permute.xlu1 %1411  ;;  %v1410_v6 = vpop.permute.xlu0 %1409 }
 0x198   : > { %v1425_v14 = vsel %vm3931_vm15, %v1410_v6, %v1412_v11  ;;  %v1667_v30 = vld [vmem:[#allocation2 + $0x238] sm:$0xff] }
 0x199   : > { %1439 = vst [vmem:[#allocation2 + $0x270] sm:$0xf0] %v1425_v14  ;;  %967 = vrot.lane.b32.xlu1 %v3296_v13, %s3953_s8  ;;  %919 = vrot.lane.b32.xlu0 %v3323_v3, %s3952_s11 }
 0x19b   : > { %v1308_v15 = vpop.permute.xlu1 %1307  ;;  %v1258_v4 = vpop.permute.xlu0 %1257 }
 0x19c   : > { %v1324_v16 = vsel %vm3932_vm13, %v1308_v15, %v1310_v55  ;;  %v1274_v17 = vsel %vm3933_vm14, %v1258_v4, %v1260_v42 }
 0x19d   : > { %1338 = vst [vmem:[#allocation2 + $0x230] sm:$0xf0] %v1324_v16  ;;  %1288 = vst [vmem:[#allocation2 + $0x230] sm:$0xf] %v1274_v17  ;;  %1017 = vrot.lane.b32.xlu1 %v3399_v31, %s3954_s13  ;;  %969 = vrot.lane.b32.xlu0 %v3309_v19, %s3953_s8 }
 0x19f   : > { %v1408_v18 = vpop.permute.xlu1 %1407  ;;  %v1358_v26 = vpop.permute.xlu0 %1357 }
 0x1a0   : > { %v1424_v23 = vsel %vm3931_vm15, %v1408_v18, %v1410_v6  ;;  %v1374_v24 = vsel %vm3930_vm0, %v1358_v26, %v1360_v9  ;;  %v1674_v32 = vld [vmem:[#allocation2 + $0x270] sm:$0xff] }
 0x1a1   : > { %1438 = vst [vmem:[#allocation2 + $0x268] sm:$0xf0] %v1424_v23  ;;  %1388 = vst [vmem:[#allocation2 + $0x268] sm:$0xf] %v1374_v24  ;;  %671 = vrot.lane.b32.xlu1 %v3375_v7, %s2667_s28  ;;  %1019 = vrot.lane.b32.xlu0 %v3323_v3, %s3954_s13  ;;  %v2325_v33 = vpack.c.bf16 %v1674_v32, %v1667_v30  ;;  %s3957_s28 = smov 56  }
 0x1a3   : > { %v3464_v35 = vpop.permute.xlu1 %1265  ;;  %v1264_v39 = vpop.permute.xlu0 %1263  ;;  %2326 = vmatprep.subr.bf16.mxu0 %v2325_v33 }
 0x1a4   : > { %v1276_v41 = vsel %vm3933_vm14, %v1262_v53, %v1264_v39  ;;  %v1277_v44 = vsel %vm3933_vm14, %v1264_v39, %v3464_v35  ;;  %v1666_v51 = vld [vmem:[#allocation2 + $0x230] sm:$0xff]  ;;  %vm1697_vm14 = vcmask 1043456  }
 0x1a5   : > { %1290 = vst [vmem:[#allocation2 + $0x240] sm:$0xf] %v1276_v41  ;;  %1291 = vst [vmem:[#allocation2 + $0x248] sm:$0xf] %v1277_v44  ;;  %771 = vrot.lane.b32.xlu1 %v3375_v7, %s2669_s9  ;;  %721 = vrot.lane.b32.xlu0 %v3309_v19, %s2668_s6  ;;  %s3958_s6 = smov 55   ;;  %s3962_s9 = smov 45  }
 0x1a6   : > { %vm3544_vm11 = vmpackc.low %vm1697_vm14, %vm2687_vm12  ;;  %vm3969_vm14 = vcmask 64512  }
 0x1a7   : > { %v3473_v10 = vpop.permute.xlu1 %1315  ;;  %v1314_v48 = vpop.permute.xlu0 %1313 }
 0x1a8   : > { %v1326_v12 = vsel %vm3932_vm13, %v1312_v0, %v1314_v48  ;;  %v1327_v50 = vsel %vm3932_vm13, %v1314_v48, %v3473_v10  ;;  %v1673_v52 = vld [vmem:[#allocation2 + $0x268] sm:$0xff]  ;;  %vm1573_vm13 = vcmask 277504  }
 0x1a9   : > { %1340 = vst [vmem:[#allocation2 + $0x240] sm:$0xf0] %v1326_v12  ;;  %1341 = vst [vmem:[#allocation2 + $0x248] sm:$0xf0] %v1327_v50  ;;  %1067 = vrot.lane.b32.xlu1 %v3296_v13, %s3955_s14  ;;  %821 = vrot.lane.b32.xlu0 %v3309_v19, %s2670_s7  ;;  %v2327_v53 = vpack.c.bf16 %v1673_v52, %v1666_v51  ;;  %s3963_s7 = smov 44  }
 0x1ab   : > { %v3482_v42 = vpop.permute.xlu1 %1365  ;;  %v1364_v54 = vpop.permute.xlu0 %1363  ;;  %2328 = vmatpush1.bf16.msra.mxu0 %v2327_v53 }
 0x1ac   : > { %v1376_v0 = vsel %vm3930_vm0, %v1362_v63, %v1364_v54  ;;  %v1377_v55 = vsel %vm3930_vm0, %v1364_v54, %v3482_v42  ;;  %vm1473_vm0 = vcmask 293888  }
 0x1ad   : > { %1390 = vst [vmem:[#allocation2 + $0x278] sm:$0xf] %v1376_v0  ;;  %1391 = vst [vmem:[#allocation2 + $0x280] sm:$0xf] %v1377_v55  ;;  %1117 = vrot.lane.b32.xlu1 %v3399_v31, %s3956_s10  ;;  %1069 = vrot.lane.b32.xlu0 %v3309_v19, %s3955_s14  ;;  %v3505_v31 = vld [vmem:[%s2866_s23 + $0x1c] sm:$0xff]  ;;  %s3961_s23 = smov 46  }
 0x1af   : > { %v3495_v13 = vpop.permute.xlu1 %1415  ;;  %v1414_v57 = vpop.permute.xlu0 %1413 }
 0x1b0   : > { %v1426_v58 = vsel %vm3931_vm15, %v1412_v11, %v1414_v57  ;;  %v1427_v59 = vsel %vm3931_vm15, %v1414_v57, %v3495_v13  ;;  %vm1523_vm15 = vcmask 285696   ;;  %v1669_v8 = vld [vmem:[#allocation2 + $0x248] sm:$0xff]  ;;  %v1668_v14 = vld [vmem:[#allocation2 + $0x240] sm:$0xff] }
 0x1b1   : > { %1440 = vst [vmem:[#allocation2 + $0x278] sm:$0xf0] %v1426_v58  ;;  %1441 = vst [vmem:[#allocation2 + $0x280] sm:$0xf0] %v1427_v59  ;;  %1167 = vrot.lane.b32.xlu1 %v3489_v56, %s3957_s28  ;;  %1119 = vrot.lane.b32.xlu0 %v3323_v3, %s3956_s10  ;;  %v3517_v3 = vcombine.low %v3505_v31, %v3505_v31 }
 0x1b3   : > { %v3507_v60 = vpop.permute.xlu1 %1461  ;;  %v1460_v61 = vpop.permute.xlu0 %1459 }
 0x1b4   : > { %v1475_v62 = vsel %vm1473_vm0, %v1460_v61, %v3507_v60 }
 0x1b5   : > { %1489 = vst [vmem:[#allocation2 + $0x2a8] sm:$0xf] %v1475_v62  ;;  %1217 = vrot.lane.b32.xlu1 %v3172_v5, %s3958_s6  ;;  %1169 = vrot.lane.b32.xlu0 %v3505_v31, %s3957_s28 }
 0x1b7   : > { %v3519_v63 = vpop.permute.xlu1 %1511  ;;  %v1510_v9 = vpop.permute.xlu0 %1509 }
 0x1b8   : > { %v1525_v11 = vsel %vm1523_vm15, %v1510_v9, %v3519_v63  ;;  %v1676_v6 = vld [vmem:[#allocation2 + $0x280] sm:$0xff]  ;;  %v1675_v15 = vld [vmem:[#allocation2 + $0x278] sm:$0xff] }
 0x1b9   : > { %1539 = vst [vmem:[#allocation2 + $0x2a8] sm:$0xf0] %v1525_v11  ;;  %871 = vrot.lane.b32.xlu1 %v3375_v7, %s3951_s24  ;;  %1219 = vrot.lane.b32.xlu0 %v3517_v3, %s3958_s6  ;;  %v2355_v4 = vpack.c.bf16 %v1676_v6, %v1669_v8  ;;  %v2357_v16 = vpack.c.bf16 %v1675_v15, %v1668_v14  ;;  %s2421_s24 = smul.u32 896, %s2742_s22 }
 0x1ba   : > { %v3586_v6 = vcombine.high %v3505_v31, %v3505_v31 }
 0x1bb   : > { %v3527_v17 = vpop.permute.xlu1 %1561  ;;  %v1560_v18 = vpop.permute.xlu0 %1559  ;;  %2356 = vmatprep.subr.bf16.mxu1 %v2355_v4 }
 0x1bc   : > { %v1575_v26 = vsel %vm1573_vm13, %v1560_v18, %v3527_v17  ;;  %2358 = vmatpush1.bf16.msra.mxu1 %v2357_v16 }
 0x1bd   : > { %1589 = vst [vmem:[#allocation2 + $0x2e0] sm:$0xf] %v1575_v26  ;;  %971 = vrot.lane.b32.xlu1 %v3375_v7, %s3953_s8  ;;  %921 = vrot.lane.b32.xlu0 %v3309_v19, %s3952_s11 }
 0x1bf   : > { %v1508_v23 = vpop.permute.xlu1 %1507  ;;  %v1458_v24 = vpop.permute.xlu0 %1457 }
 0x1c0   : > { %v1524_v30 = vsel %vm1523_vm15, %v1508_v23, %v1510_v9  ;;  %v1474_v32 = vsel %vm1473_vm0, %v1458_v24, %v1460_v61  ;;  %v1681_v48 = vld [vmem:[#allocation2 + $0x2a8] sm:$0xff]  ;;  %v1600_v23 = vld [vmem:[#allocation2 + $0x20] sm:$0xff] }
 0x1c1   : > { %1538 = vst [vmem:[#allocation2 + $0x2a0] sm:$0xf0] %v1524_v30  ;;  %1488 = vst [vmem:[#allocation2 + $0x2a0] sm:$0xf] %v1474_v32  ;;  %1267 = vrot.lane.b32.xlu1 %v3489_v56, %s2679_s16  ;;  %1021 = vrot.lane.b32.xlu0 %v3309_v19, %s3954_s13 }
 0x1c3   : > { %v368_v33 = vpop.permute.xlu1 %367  ;;  %v1558_v39 = vpop.permute.xlu0 %1557 }
 0x1c4   : > { %v378_v41 = vsel %vm373_vm1, %v3057_v38, %v368_v33  ;;  %v1574_v44 = vsel %vm1573_vm13, %v1558_v39, %v1560_v18  ;;  %v1688_v12 = vld [vmem:[#allocation2 + $0x2e0] sm:$0xf]  ;;  %v1601_v18 = vld [vmem:[#allocation2 + $0x28] sm:$0xff] }
 0x1c5   : > { %392 = vst [vmem:[#allocation2 + $0x58] sm:$0xf] %v378_v41  ;;  %1588 = vst [vmem:[#allocation2 + $0x2d8] sm:$0xf] %v1574_v44  ;;  %1317 = vrot.lane.b32.xlu1 %v3172_v5, %s3961_s23  ;;  %1269 = vrot.lane.b32.xlu0 %v3505_v31, %s2679_s16  ;;  %v2329_v51 = vpack.c.bf16 %v1688_v12, %v1681_v48 }
 0x1c7   : > { %v418_v52 = vpop.permute.xlu1 %417  ;;  %v3552_v38 = vpop.permute.xlu0 %369  ;;  %2331 = vmatprep.subr.msk.bf16.mxu0 %vm3544_vm11, %v2329_v51 }
 0x1c8   : > { %v428_v53 = vsel %vm423_vm2, %v3066_v45, %v418_v52  ;;  %v379_v54 = vsel %vm373_vm1, %v368_v33, %v3552_v38  ;;  %v1680_v58 = vld [vmem:[#allocation2 + $0x2a0] sm:$0xff] }
 0x1c9   : > { %442 = vst [vmem:[#allocation2 + $0x58] sm:$0xf0] %v428_v53  ;;  %393 = vst [vmem:[#allocation2 + $0x60] sm:$0xf] %v379_v54  ;;  %1367 = vrot.lane.b32.xlu1 %v3489_v56, %s3962_s9  ;;  %1319 = vrot.lane.b32.xlu0 %v3517_v3, %s3961_s23 }
 0x1cb   : > { %v1464_v0 = vpop.permute.xlu1 %1463  ;;  %v3564_v55 = vpop.permute.xlu0 %419 }
 0x1cc   : > { %v1476_v57 = vsel %vm1473_vm0, %v3507_v60, %v1464_v0  ;;  %v429_v45 = vsel %vm423_vm2, %v418_v52, %v3564_v55  ;;  %v1687_v59 = vld [vmem:[#allocation2 + $0x2d8] sm:$0xf] }
 0x1cd   : > { %1490 = vst [vmem:[#allocation2 + $0x2b0] sm:$0xf] %v1476_v57  ;;  %443 = vst [vmem:[#allocation2 + $0x60] sm:$0xf0] %v429_v45  ;;  %1417 = vrot.lane.b32.xlu1 %v3172_v5, %s3963_s7  ;;  %1369 = vrot.lane.b32.xlu0 %v3505_v31, %s3962_s9  ;;  %v2332_v61 = vpack.c.bf16 %v1687_v59, %v1680_v58  ;;  %v3578_v60 = vld [vmem:[#allocation6] sm:$0xff] }
 0x1cf   : > { %v1514_v62 = vpop.permute.xlu1 %1513  ;;  %v3574_v9 = vpop.permute.xlu0 %1465  ;;  %2334 = vmatpush1.bf16.msk.msra.mxu0 %vm3544_vm11, %v2332_v61 }
 0x1d0   : > { %v1526_v8 = vsel %vm1523_vm15, %v3519_v63, %v1514_v62  ;;  %v1477_v11 = vsel %vm1473_vm0, %v1464_v0, %v3574_v9  ;;  %v1607_v15 = vld [vmem:[#allocation2 + $0x58] sm:$0xff] }
 0x1d1   : > { %1540 = vst [vmem:[#allocation2 + $0x2b0] sm:$0xf0] %v1526_v8  ;;  %1491 = vst [vmem:[#allocation2 + $0x2b8] sm:$0xf] %v1477_v11  ;;  %1071 = vrot.lane.b32.xlu1 %v3375_v7, %s3955_s14  ;;  %1419 = vrot.lane.b32.xlu0 %v3517_v3, %s3963_s7  ;;  %v2367_v24 = vpack.c.bf16 %v1607_v15, %v1600_v23  ;;  %s3847_s14 = scalar_lea.hbm %s3896_s3, %s2421_s24 }
 0x1d2   : > { %2247 = vmatmul.mubr.msk.f32.vlgmr.msra.gmra.mrb[0].mxu0 %vm573_vm5, %v3578_v60 }
 0x1d3   : > { %v1564_v14 = vpop.permute.xlu1 %1563  ;;  %v3594_v63 = vpop.permute.xlu0 %1515  ;;  %1925 = vmatprep.mubr.f32.mxu0 %v2686_v25 }
 0x1d4   : > { %v1576_v4 = vsel %vm1573_vm13, %v3527_v17, %v1564_v14  ;;  %v1527_v16 = vsel %vm1523_vm15, %v1514_v62, %v3594_v63  ;;  %v1608_v7 = vld [vmem:[#allocation2 + $0x60] sm:$0xff] }
 0x1d5   : > { %1590 = vst [vmem:[#allocation2 + $0x2e8] sm:$0xf] %v1576_v4  ;;  %1541 = vst [vmem:[#allocation2 + $0x2b8] sm:$0xf0] %v1527_v16  ;;  %1171 = vrot.lane.b32.xlu1 %v3586_v6, %s3957_s28  ;;  %1121 = vrot.lane.b32.xlu0 %v3309_v19, %s3956_s10  ;;  %v2365_v26 = vpack.c.bf16 %v1608_v7, %v1601_v18  ;;  %s2080_s10 = scalar_lea.sflag [#allocation5], %s2862_s15 }
 0x1d7   : > { %v468_v30 = vpop.permute.xlu1 %467  ;;  %v3605_v32 = vpop.permute.xlu0 %1565  ;;  %2366 = vmatprep.subr.bf16.mxu0 %v2365_v26 }
 0x1d8   : > { %v478_v17 = vsel %vm473_vm3, %v3137_v28, %v468_v30  ;;  %v1577_v33 = vsel %vm1573_vm13, %v1564_v14, %v3605_v32  ;;  %2368 = vmatpush1.bf16.msra.mxu0 %v2367_v24  ;;  %v1682_v54 = vld [vmem:[#allocation2 + $0x2b0] sm:$0xff] }
 0x1d9   : > { %492 = vst [vmem:[#allocation2 + $0x90] sm:$0xf] %v478_v17  ;;  %1591 = vst [vmem:[#allocation2 + $0x2f0] sm:$0xf] %v1577_v33  ;;  %1467 = vrot.lane.b32.xlu1 %v3489_v56, %s2683_s26  ;;  %1221 = vrot.lane.b32.xlu0 %v3505_v31, %s3958_s6  ;;  %v1602_v17 = vld [vmem:[#allocation2 + $0x30] sm:$0xff]  ;;  %s2690_s6 = smov [#allocation8]  }
 0x1db   : > { %v518_v19 = vpop.permute.xlu1 %517  ;;  %v3615_v39 = vpop.permute.xlu0 %469 }
 0x1dc   : > { %v528_v41 = vsel %vm523_vm4, %v3147_v1, %v518_v19  ;;  %v479_v28 = vsel %vm473_vm3, %v468_v30, %v3615_v39  ;;  %v1689_v12 = vld [vmem:[#allocation2 + $0x2e8] sm:$0xf]  ;;  %v1683_v52 = vld [vmem:[#allocation2 + $0x2b8] sm:$0xff] }
 0x1dd   : > { %542 = vst [vmem:[#allocation2 + $0x90] sm:$0xf0] %v528_v41  ;;  %493 = vst [vmem:[#allocation2 + $0x98] sm:$0xf] %v479_v28  ;;  %1517 = vrot.lane.b32.xlu1 %v3172_v5, %s2684_s17  ;;  %1469 = vrot.lane.b32.xlu0 %v3505_v31, %s2683_s26  ;;  %v2362_v0 = vpack.c.bf16 %v1689_v12, %v1682_v54 }
 0x1df   : > { %v568_v44 = vpop.permute.xlu1 %567  ;;  %v3625_v48 = vpop.permute.xlu0 %519 }
 0x1e0   : > { %v578_v51 = vsel %vm573_vm5, %v3157_v37, %v568_v44  ;;  %v529_v1 = vsel %vm523_vm4, %v518_v19, %v3625_v48  ;;  %v1690_v53 = vld [vmem:[#allocation2 + $0x2f0] sm:$0xf] }
 0x1e1   : > { %592 = vst [vmem:[#allocation2 + $0xc8] sm:$0xf] %v578_v51  ;;  %543 = vst [vmem:[#allocation2 + $0x98] sm:$0xf0] %v529_v1  ;;  %1567 = vrot.lane.b32.xlu1 %v3489_v56, %s2685_s12  ;;  %1519 = vrot.lane.b32.xlu0 %v3517_v3, %s2684_s17  ;;  %v2359_v5 = vpack.c.bf16 %v1690_v53, %v1683_v52  ;;  %v2688_v56 = vmov 0.0|0.0  }
 0x1e3   : > { %v618_v57 = vpop.permute.xlu1 %617  ;;  %v3635_v45 = vpop.permute.xlu0 %569  ;;  %2361 = vmatprep.subr.msk.bf16.mxu1 %vm3544_vm11, %v2359_v5 }
 0x1e4   : > { %v628_v37 = vsel %vm623_vm6, %v3174_v43, %v618_v57  ;;  %v579_v58 = vsel %vm573_vm5, %v568_v44, %v3635_v45  ;;  %2364 = vmatpush1.bf16.msk.msra.mxu1 %vm3544_vm11, %v2362_v0  ;;  %v1614_v26 = vld [vmem:[#allocation2 + $0x90] sm:$0xff] }
 0x1e5   : > { %642 = vst [vmem:[#allocation2 + $0xc8] sm:$0xf0] %v628_v37  ;;  %593 = vst [vmem:[#allocation2 + $0xd0] sm:$0xf] %v579_v58  ;;  %1271 = vrot.lane.b32.xlu1 %v3586_v6, %s2679_s16  ;;  %1569 = vrot.lane.b32.xlu0 %v3505_v31, %s2685_s12 }
 0x1e6   : > { %2395 = vmatprep.subr.bf16.mxu1 %v2688_v56 }
 0x1e7   : > { %v372_v3 = vpop.permute.xlu1 %371  ;;  %v3650_v59 = vpop.permute.xlu0 %619  ;;  %2250 = vmatmul.mubr.msk.f32.vlgmr.msra.gmra.mrb[0].mxu1 %vm573_vm5, %v3578_v60 }
 0x1e8   : > { %v380_v43 = vsel %vm373_vm1, %v3552_v38, %v372_v3  ;;  %v629_v61 = vsel %vm623_vm6, %v618_v57, %v3650_v59  ;;  %v1615_v18 = vld [vmem:[#allocation2 + $0x98] sm:$0xff]  ;;  %vm2689_vm1 = vmmov 0  }
 0x1e9   : > { %394 = vst [vmem:[#allocation2 + $0x68] sm:$0xf] %v380_v43  ;;  %643 = vst [vmem:[#allocation2 + $0xd0] sm:$0xf0] %v629_v61  ;;  %1371 = vrot.lane.b32.xlu1 %v3586_v6, %s3962_s9  ;;  %1321 = vrot.lane.b32.xlu0 %v3505_v31, %s3961_s23  ;;  %s2590_s23 = sshll.u32 %s2690_s6, 4  ;;  %s2591_s23 = int_to_ptr.vmem [resolvable:$false] %s2590_s23 }
 0x1ea   : > { %2302 = vmatprep.mubr.msk.f32.mxu1 %vm2689_vm1, %v2686_v25  ;;  %s2592_s9 = scalar_lea.vmem %s2591_s23, 1792 }
 0x1eb   : > { %v668_v62 = vpop.permute.xlu1 %667  ;;  %v422_v8 = vpop.permute.xlu0 %421 }
 0x1ec   : > { %v678_v11 = vsel %vm673_vm7, %v3223_v22, %v668_v62  ;;  %v430_v14 = vsel %vm423_vm2, %v3564_v55, %v422_v8  ;;  %v1621_v4 = vld [vmem:[#allocation2 + $0xc8] sm:$0xff]  ;;  %vm3964_vm2 = vcmask 146432  }
 0x1ed   : > { %692 = vst [vmem:[#allocation2 + $0x100] sm:$0xf] %v678_v11  ;;  %444 = vst [vmem:[#allocation2 + $0x68] sm:$0xf0] %v430_v14  ;;  %1471 = vrot.lane.b32.xlu1 %v3586_v6, %s2683_s26  ;;  %1421 = vrot.lane.b32.xlu0 %v3505_v31, %s3963_s7  ;;  %v2371_v23 = vpack.c.bf16 %v1621_v4, %v1614_v26 }
 0x1ef   : > { %v718_v38 = vpop.permute.xlu1 %717  ;;  %v3670_v15 = vpop.permute.xlu0 %669 }
 0x1f0   : > { %v728_v16 = vsel %vm723_vm8, %v3232_v27, %v718_v38  ;;  %v679_v22 = vsel %vm673_vm7, %v668_v62, %v3670_v15  ;;  %v1622_v55 = vld [vmem:[#allocation2 + $0xd0] sm:$0xff] }
 0x1f1   : > { %742 = vst [vmem:[#allocation2 + $0x100] sm:$0xf0] %v728_v16  ;;  %693 = vst [vmem:[#allocation2 + $0x108] sm:$0xf] %v679_v22  ;;  %1571 = vrot.lane.b32.xlu1 %v3586_v6, %s2685_s12  ;;  %1521 = vrot.lane.b32.xlu0 %v3505_v31, %s2684_s17  ;;  %v2369_v7 = vpack.c.bf16 %v1622_v55, %v1615_v18  ;;  %s2420_s12 = smul.u32 56, %s2862_s15 }
 0x1f3   : > { %v768_v27 = vpop.permute.xlu1 %767  ;;  %v3681_v24 = vpop.permute.xlu0 %719  ;;  %2370 = vmatprep.subr.bf16.mxu0 %v2369_v7  ;;  %s3833_s26 = scalar_lea.vmem [#allocation8], %s2420_s12 }
 0x1f4   : > { %v778_v30 = vsel %vm773_vm9, %v3242_v34, %v768_v27  ;;  %v729_v25 = vsel %vm723_vm8, %v718_v38, %v3681_v24  ;;  %2372 = vmatpush1.bf16.msra.mxu0 %v2371_v23  ;;  %v1609_v33 = vld [vmem:[#allocation2 + $0x68] sm:$0xff]  ;;  %s2102_s11 = sshll.u32 %s3833_s26, 4  ;;  %s2103_s11 = int_to_ptr.vmem [resolvable:$true] %s2102_s11 }
 0x1f5   : > { %792 = vst [vmem:[#allocation2 + $0x138] sm:$0xf] %v778_v30  ;;  %743 = vst [vmem:[#allocation2 + $0x108] sm:$0xf0] %v729_v25  ;;  %v2396_v6 = vpack.c.bf16 %v1609_v33, %v1602_v17  ;;  %s2586_s28 = scalar_lea.vmem %s2103_s11, 896  ;;  %p2593_p13 = scmp.lt.s32.totalorder %s2103_s11, %s2591_s23 }
 0x1f6   : > { %p2587_p6 = scmp.ne.s32.totalorder %s2103_s11, %s2586_s28  ;;  %p2594_p11 = scmp.lt.s32.totalorder %s2592_s9, %s2586_s28 }
 0x1f7   : > { %v818_v31 = vpop.permute.xlu1 %817  ;;  %v3687_v19 = vpop.permute.xlu0 %769  ;;  %2397 = vmatpush3.bf16.msra.mxu1 %v2396_v6 }
 0x1f8   : > { %v828_v41 = vsel %vm823_vm10, %v3251_v40, %v818_v31  ;;  %v779_v28 = vsel %vm773_vm9, %v768_v27, %v3687_v19  ;;  %2398 = vmatprep.subr.bf16.mxu1 %v2688_v56  ;;  %p2588_p9 = pnand %p2587_p6, %p2813_p8  ;;  %p2595_p5 = por %p2594_p11, %p2593_p13 }
 0x1f9   : > { %842 = vst [vmem:[#allocation2 + $0x138] sm:$0xf0] %v828_v41  ;;  %793 = vst [vmem:[#allocation2 + $0x140] sm:$0xf] %v779_v28 }
 0x1fa   : > { %p2589_p12 = pneg %p2588_p9 }
 0x1fb   : > { %v472_v34 = vpop.permute.xlu1 %471  ;;  %v3694_v44 = vpop.permute.xlu0 %819 }
 0x1fc   : > { %v480_v12 = vsel %vm473_vm3, %v3615_v39, %v472_v34  ;;  %v829_v51 = vsel %vm823_vm10, %v818_v31, %v3694_v44  ;;  %v1629_v37 = vld [vmem:[#allocation2 + $0x108] sm:$0xff]  ;;  %vm3965_vm3 = vcmask 138240   ;;  %p2596_p10 = pnand %p2595_p5, %p2589_p12 }
 0x1fd   : > { %494 = vst [vmem:[#allocation2 + $0xa0] sm:$0xf] %v480_v12  ;;  %843 = vst [vmem:[#allocation2 + $0x140] sm:$0xf0] %v829_v51 }
 0x1fe   : > { %vm3968_vm12 = vmmov %vm3965_vm3 }
 0x1ff   : > { %v572_v1 = vpop.permute.xlu1 %571  ;;  %v522_v40 = vpop.permute.xlu0 %521 }
 0x200   : > { %v580_v52 = vsel %vm573_vm5, %v3635_v45, %v572_v1  ;;  %v530_v53 = vsel %vm523_vm4, %v3625_v48, %v522_v40  ;;  %v1635_v0 = vld [vmem:[#allocation2 + $0x138] sm:$0xff]  ;;  %v1628_v45 = vld [vmem:[#allocation2 + $0x100] sm:$0xff]  ;;  %vm3966_vm4 = vmmov %vm3964_vm2 }
 0x201   : > { %594 = vst [vmem:[#allocation2 + $0xd8] sm:$0xf] %v580_v52  ;;  %544 = vst [vmem:[#allocation2 + $0xa0] sm:$0xf0] %v530_v53  ;;  %v2375_v43 = vpack.c.bf16 %v1635_v0, %v1628_v45 }
 0x203   : > { %v868_v5 = vpop.permute.xlu1 %867  ;;  %v622_v54 = vpop.permute.xlu0 %621 }
 0x204   : > { %v878_v39 = vsel %vm3964_vm2, %v3311_v20, %v868_v5  ;;  %v630_v57 = vsel %vm623_vm6, %v3650_v59, %v622_v54  ;;  %v1636_v58 = vld [vmem:[#allocation2 + $0x140] sm:$0xff]  ;;  %vm3967_vm6 = vcmask 130048   ;;  %vm3971_vm2 = vmmov %vm3969_vm14 }
 0x205   : > { %892 = vst [vmem:[#allocation2 + $0x170] sm:$0xf] %v878_v39  ;;  %644 = vst [vmem:[#allocation2 + $0xd8] sm:$0xf0] %v630_v57  ;;  %v2373_v3 = vpack.c.bf16 %v1636_v58, %v1629_v37 }
 0x206   : > { %vm3970_vm1 = vmmov %vm3967_vm6 }
 0x207   : > { %v918_v61 = vpop.permute.xlu1 %917  ;;  %v3708_v48 = vpop.permute.xlu0 %869  ;;  %2374 = vmatprep.subr.bf16.mxu0 %v2373_v3 }
 0x208   : > { %v928_v62 = vsel %vm3965_vm3, %v3327_v29, %v918_v61  ;;  %v879_v20 = vsel %vm3966_vm4, %v868_v5, %v3708_v48  ;;  %2376 = vmatpush1.bf16.msra.mxu0 %v2375_v43  ;;  %v1616_v38 = vld [vmem:[#allocation2 + $0xa0] sm:$0xff]  ;;  %vm3977_vm4 = vcmask 449536  }
 0x209   : > { %942 = vst [vmem:[#allocation2 + $0x170] sm:$0xf0] %v928_v62  ;;  %893 = vst [vmem:[#allocation2 + $0x178] sm:$0xf] %v879_v20 }
 0x20b   : > { %v968_v59 = vpop.permute.xlu1 %967  ;;  %v3714_v8 = vpop.permute.xlu0 %919 }
 0x20c   : > { %v978_v11 = vsel %vm3967_vm6, %v3337_v36, %v968_v59  ;;  %v929_v14 = vsel %vm3968_vm12, %v918_v61, %v3714_v8  ;;  %v1623_v4 = vld [vmem:[#allocation2 + $0xd8] sm:$0xff]  ;;  %vm3979_vm12 = vcmask 146432  }
 0x20d   : > { %992 = vst [vmem:[#allocation2 + $0x1a8] sm:$0xf] %v978_v11  ;;  %943 = vst [vmem:[#allocation2 + $0x178] sm:$0xf0] %v929_v14  ;;  %v2399_v29 = vpack.c.bf16 %v1623_v4, %v1616_v38 }
 0x20f   : > { %v1018_v16 = vpop.permute.xlu1 %1017  ;;  %v3720_v22 = vpop.permute.xlu0 %969  ;;  %2400 = vmatpush3.bf16.msra.mxu1 %v2399_v29 }
 0x210   : > { %v1028_v18 = vsel %vm3969_vm14, %v3347_v46, %v1018_v16  ;;  %v979_v55 = vsel %vm3970_vm1, %v968_v59, %v3720_v22  ;;  %2401 = vmatprep.subr.bf16.mxu1 %v2688_v56  ;;  %vm3980_vm14 = vmmov %vm3977_vm4 }
 0x211   : > { %1042 = vst [vmem:[#allocation2 + $0x1a8] sm:$0xf0] %v1028_v18  ;;  %993 = vst [vmem:[#allocation2 + $0x1b0] sm:$0xf] %v979_v55 }
 0x213   : > { %v672_v36 = vpop.permute.xlu1 %671  ;;  %v3727_v7 = vpop.permute.xlu0 %1019 }
 0x214   : > { %v680_v26 = vsel %vm673_vm7, %v3670_v15, %v672_v36  ;;  %v1029_v23 = vsel %vm3971_vm2, %v1018_v16, %v3727_v7  ;;  %vm3972_vm7 = vcmask 56320   ;;  %v1643_v41 = vld [vmem:[#allocation2 + $0x178] sm:$0xff]  ;;  %vm3981_vm2 = vcmask 138240  }
 0x215   : > { %694 = vst [vmem:[#allocation2 + $0x110] sm:$0xf] %v680_v26  ;;  %1043 = vst [vmem:[#allocation2 + $0x1b0] sm:$0xf0] %v1029_v23 }
 0x217   : > { %v772_v27 = vpop.permute.xlu1 %771  ;;  %v722_v46 = vpop.permute.xlu0 %721 }
 0x218   : > { %v780_v30 = vsel %vm773_vm9, %v3687_v19, %v772_v27  ;;  %v730_v25 = vsel %vm723_vm8, %v3681_v24, %v722_v46  ;;  %v1649_v6 = vld [vmem:[#allocation2 + $0x1a8] sm:$0xff]  ;;  %v1642_v19 = vld [vmem:[#allocation2 + $0x170] sm:$0xff]  ;;  %vm3973_vm8 = vcmask 48128   ;;  %vm3974_vm9 = vmmov %vm3972_vm7 }
 0x219   : > { %794 = vst [vmem:[#allocation2 + $0x148] sm:$0xf] %v780_v30  ;;  %744 = vst [vmem:[#allocation2 + $0x110] sm:$0xf0] %v730_v25  ;;  %v2379_v12 = vpack.c.bf16 %v1649_v6, %v1642_v19 }
 0x21a   : > { %vm3976_vm3 = vmmov %vm3973_vm8 }
 0x21b   : > { %v1068_v17 = vpop.permute.xlu1 %1067  ;;  %v822_v33 = vpop.permute.xlu0 %821 }
 0x21c   : > { %v1078_v15 = vsel %vm3972_vm7, %v3393_v21, %v1068_v17  ;;  %v830_v31 = vsel %vm823_vm10, %v3694_v44, %v822_v33  ;;  %v1650_v28 = vld [vmem:[#allocation2 + $0x1b0] sm:$0xff]  ;;  %vm3975_vm10 = vcmask 457728   ;;  %vm3982_vm7 = vcmask 441344  }
 0x21d   : > { %1092 = vst [vmem:[#allocation2 + $0x1e0] sm:$0xf] %v1078_v15  ;;  %844 = vst [vmem:[#allocation2 + $0x148] sm:$0xf0] %v830_v31  ;;  %v2377_v34 = vpack.c.bf16 %v1650_v28, %v1643_v41 }
 0x21e   : > { %vm3978_vm6 = vmmov %vm3975_vm10 }
 0x21f   : > { %v1118_v51 = vpop.permute.xlu1 %1117  ;;  %v3741_v24 = vpop.permute.xlu0 %1069  ;;  %2378 = vmatprep.subr.bf16.mxu0 %v2377_v34 }
 0x220   : > { %v1128_v1 = vsel %vm3973_vm8, %v3405_v2, %v1118_v51  ;;  %v1079_v21 = vsel %vm3974_vm9, %v1068_v17, %v3741_v24  ;;  %2380 = vmatpush1.bf16.msra.mxu0 %v2379_v12  ;;  %v1630_v5 = vld [vmem:[#allocation2 + $0x110] sm:$0xff]  ;;  %vm3983_vm8 = vcmask 64512   ;;  %vm3984_vm9 = vcmask 375808  }
 0x221   : > { %1142 = vst [vmem:[#allocation2 + $0x1e0] sm:$0xf0] %v1128_v1  ;;  %1093 = vst [vmem:[#allocation2 + $0x1e8] sm:$0xf] %v1079_v21 }
 0x223   : > { %v1168_v44 = vpop.permute.xlu1 %1167  ;;  %v3747_v40 = vpop.permute.xlu0 %1119 }
 0x224   : > { %v1178_v52 = vsel %vm3975_vm10, %v3414_v47, %v1168_v44  ;;  %v1129_v53 = vsel %vm3976_vm3, %v1118_v51, %v3747_v40  ;;  %v1637_v54 = vld [vmem:[#allocation2 + $0x148] sm:$0xff]  ;;  %vm3985_vm10 = vmmov %vm3982_vm7  ;;  %vm3986_vm3 = vcmask 367616  }
 0x225   : > { %1192 = vst [vmem:[#allocation2 + $0x218] sm:$0xf] %v1178_v52  ;;  %1143 = vst [vmem:[#allocation2 + $0x1e8] sm:$0xf0] %v1129_v53  ;;  %v2402_v2 = vpack.c.bf16 %v1637_v54, %v1630_v5 }
 0x227   : > { %v1218_v0 = vpop.permute.xlu1 %1217  ;;  %v3753_v39 = vpop.permute.xlu0 %1169  ;;  %2403 = vmatpush3.bf16.msra.mxu1 %v2402_v2 }
 0x228   : > { %v1228_v57 = vsel %vm3977_vm4, %v3423_v49, %v1218_v0  ;;  %v1179_v37 = vsel %vm3978_vm6, %v1168_v44, %v3753_v39  ;;  %2404 = vmatprep.subr.bf16.mxu1 %v2688_v56  ;;  %v1656_v16 = vld [vmem:[#allocation2 + $0x1e0] sm:$0xff]  ;;  %vm3987_vm4 = vmmov %vm3984_vm9  ;;  %vm3988_vm6 = vcmask 359424  }
 0x229   : > { %1242 = vst [vmem:[#allocation2 + $0x218] sm:$0xf0] %v1228_v57  ;;  %1193 = vst [vmem:[#allocation2 + $0x220] sm:$0xf] %v1179_v37 }
 0x22b   : > { %v872_v47 = vpop.permute.xlu1 %871  ;;  %v3760_v58 = vpop.permute.xlu0 %1219 }
 0x22c   : > { %v880_v3 = vsel %vm3979_vm12, %v3708_v48, %v872_v47  ;;  %v1229_v45 = vsel %vm3980_vm14, %v1218_v0, %v3760_v58  ;;  %v1657_v38 = vld [vmem:[#allocation2 + $0x1e8] sm:$0xff]  ;;  %vm3989_vm12 = vmmov %vm3986_vm3  ;;  %vm3990_vm14 = vcmask 56320  }
 0x22d   : > { %894 = vst [vmem:[#allocation2 + $0x180] sm:$0xf] %v880_v3  ;;  %1243 = vst [vmem:[#allocation2 + $0x220] sm:$0xf0] %v1229_v45 }
 0x22f   : > { %v972_v43 = vpop.permute.xlu1 %971  ;;  %v922_v49 = vpop.permute.xlu0 %921 }
 0x230   : > { %v980_v61 = vsel %vm3970_vm1, %v3720_v22, %v972_v43  ;;  %v930_v62 = vsel %vm3981_vm2, %v3714_v8, %v922_v49  ;;  %v1663_v11 = vld [vmem:[#allocation2 + $0x218] sm:$0xff]  ;;  %vm3991_vm1 = vmmov %vm3988_vm6  ;;  %vm3992_vm2 = vcmask 457728  }
 0x231   : > { %994 = vst [vmem:[#allocation2 + $0x1b8] sm:$0xf] %v980_v61  ;;  %944 = vst [vmem:[#allocation2 + $0x180] sm:$0xf0] %v930_v62  ;;  %v2383_v22 = vpack.c.bf16 %v1663_v11, %v1656_v16 }
 0x233   : > { %v1268_v20 = vpop.permute.xlu1 %1267  ;;  %v1022_v59 = vpop.permute.xlu0 %1021 }
 0x234   : > { %v1278_v48 = vsel %vm3982_vm7, %v3464_v35, %v1268_v20  ;;  %v1030_v14 = vsel %vm3983_vm8, %v3727_v7, %v1022_v59  ;;  %v1664_v4 = vld [vmem:[#allocation2 + $0x220] sm:$0xff]  ;;  %vm3993_vm7 = vcmask 48128   ;;  %vm3994_vm8 = vcmask 449536  }
 0x235   : > { %1292 = vst [vmem:[#allocation2 + $0x250] sm:$0xf] %v1278_v48  ;;  %1044 = vst [vmem:[#allocation2 + $0x1b8] sm:$0xf0] %v1030_v14  ;;  %v2381_v29 = vpack.c.bf16 %v1664_v4, %v1657_v38 }
 0x237   : > { %v1318_v18 = vpop.permute.xlu1 %1317  ;;  %v3774_v8 = vpop.permute.xlu0 %1269  ;;  %2382 = vmatprep.subr.bf16.mxu0 %v2381_v29 }
 0x238   : > { %v1328_v55 = vsel %vm3984_vm9, %v3473_v10, %v1318_v18  ;;  %v1279_v35 = vsel %vm3985_vm10, %v1268_v20, %v3774_v8  ;;  %2384 = vmatpush1.bf16.msra.mxu0 %v2383_v22  ;;  %v1644_v27 = vld [vmem:[#allocation2 + $0x180] sm:$0xff]  ;;  %vm3995_vm9 = vmmov %vm3985_vm10 }
 0x239   : > { %1342 = vst [vmem:[#allocation2 + $0x250] sm:$0xf0] %v1328_v55  ;;  %1293 = vst [vmem:[#allocation2 + $0x258] sm:$0xf] %v1279_v35 }
 0x23a   : > { %vm3996_vm10 = vmmov %vm3986_vm3 }
 0x23b   : > { %v1368_v36 = vpop.permute.xlu1 %1367  ;;  %v3780_v7 = vpop.permute.xlu0 %1319 }
 0x23c   : > { %v1378_v26 = vsel %vm3986_vm3, %v3482_v42, %v1368_v36  ;;  %v1329_v23 = vsel %vm3987_vm4, %v1318_v18, %v3780_v7  ;;  %v1651_v46 = vld [vmem:[#allocation2 + $0x1b8] sm:$0xff]  ;;  %vm3997_vm3 = vmmov %vm3987_vm4 }
 0x23d   : > { %1392 = vst [vmem:[#allocation2 + $0x288] sm:$0xf] %v1378_v26  ;;  %1343 = vst [vmem:[#allocation2 + $0x258] sm:$0xf0] %v1329_v23  ;;  %v2405_v10 = vpack.c.bf16 %v1651_v46, %v1644_v27 }
 0x23e   : > { %vm3998_vm4 = vmmov %vm3991_vm1 }
 0x23f   : > { %v1418_v30 = vpop.permute.xlu1 %1417  ;;  %v1370_v25 = vpop.permute.xlu0 %1369  ;;  %2406 = vmatpush3.bf16.msra.mxu1 %v2405_v10 }
 0x240   : > { %v1428_v17 = vsel %vm3988_vm6, %v3495_v13, %v1418_v30  ;;  %v1379_v33 = vsel %vm3989_vm12, %v1368_v36, %v1370_v25  ;;  %2407 = vmatprep.subr.bf16.mxu1 %v2688_v56  ;;  %v1670_v53 = vld [vmem:[#allocation2 + $0x250] sm:$0xff] }
 0x241   : > { %1442 = vst [vmem:[#allocation2 + $0x288] sm:$0xf0] %v1428_v17  ;;  %1393 = vst [vmem:[#allocation2 + $0x290] sm:$0xf] %v1379_v33  ;;  %v2009_v33 = vld [vmem:[%s3895_s2] sm:$0xff] }
 0x243   : > { %v1072_v42 = vpop.permute.xlu1 %1071  ;;  %v1420_v6 = vpop.permute.xlu0 %1419 }
 0x244   : > { %v1080_v15 = vsel %vm3990_vm14, %v3741_v24, %v1072_v42  ;;  %v1429_v31 = vsel %vm3991_vm1, %v1418_v30, %v1420_v6  ;;  %v1671_v21 = vld [vmem:[#allocation2 + $0x258] sm:$0xff]  ;;  %v2011_v30 = vlaneseq }
 0x245   : > { %1094 = vst [vmem:[#allocation2 + $0x1f0] sm:$0xf] %v1080_v15  ;;  %1443 = vst [vmem:[#allocation2 + $0x290] sm:$0xf0] %v1429_v31 }
 0x247   : > { %v1172_v41 = vpop.permute.xlu1 %1171  ;;  %v1122_v28 = vpop.permute.xlu0 %1121 }
 0x248   : > { %v1180_v13 = vsel %vm3992_vm2, %v3753_v39, %v1172_v41  ;;  %v1130_v34 = vsel %vm3993_vm7, %v3747_v40, %v1122_v28  ;;  %v1677_v51 = vld [vmem:[#allocation2 + $0x288] sm:$0xff] }
 0x249   : > { %1194 = vst [vmem:[#allocation2 + $0x228] sm:$0xf] %v1180_v13  ;;  %1144 = vst [vmem:[#allocation2 + $0x1f0] sm:$0xf0] %v1130_v34  ;;  %v2387_v5 = vpack.c.bf16 %v1677_v51, %v1670_v53 }
 0x24b   : > { %v1468_v19 = vpop.permute.xlu1 %1467  ;;  %v1222_v12 = vpop.permute.xlu0 %1221 }
 0x24c   : > { %v1478_v24 = vsel %vm1473_vm0, %v3574_v9, %v1468_v19  ;;  %v1230_v1 = vsel %vm3994_vm8, %v3760_v58, %v1222_v12  ;;  %v1678_v44 = vld [vmem:[#allocation2 + $0x290] sm:$0xff] }
 0x24d   : > { %1492 = vst [vmem:[#allocation2 + $0x2c0] sm:$0xf] %v1478_v24  ;;  %1244 = vst [vmem:[#allocation2 + $0x228] sm:$0xf0] %v1230_v1  ;;  %v2385_v52 = vpack.c.bf16 %v1678_v44, %v1671_v21 }
 0x24f   : > { %v1518_v54 = vpop.permute.xlu1 %1517  ;;  %v1470_v40 = vpop.permute.xlu0 %1469  ;;  %2386 = vmatprep.subr.bf16.mxu0 %v2385_v52 }
 0x250   : > { %v1528_v2 = vsel %vm1523_vm15, %v3594_v63, %v1518_v54  ;;  %v1479_v0 = vsel %vm1473_vm0, %v1468_v19, %v1470_v40  ;;  %2388 = vmatpush1.bf16.msra.mxu0 %v2387_v5  ;;  %v1658_v47 = vld [vmem:[#allocation2 + $0x1f0] sm:$0xff] }
 0x251   : > { %1542 = vst [vmem:[#allocation2 + $0x2c0] sm:$0xf0] %v1528_v2  ;;  %1493 = vst [vmem:[#allocation2 + $0x2c8] sm:$0xf] %v1479_v0 }
 0x253   : > { %v1568_v9 = vpop.permute.xlu1 %1567  ;;  %v1520_v39 = vpop.permute.xlu0 %1519 }
 0x254   : > { %v1578_v57 = vsel %vm1573_vm13, %v3605_v32, %v1568_v9  ;;  %v1529_v37 = vsel %vm1523_vm15, %v1518_v54, %v1520_v39  ;;  %v1665_v58 = vld [vmem:[#allocation2 + $0x228] sm:$0xff] }
 0x255   : > { %1592 = vst [vmem:[#allocation2 + $0x2f8] sm:$0xf] %v1578_v57  ;;  %1543 = vst [vmem:[#allocation2 + $0x2c8] sm:$0xf0] %v1529_v37  ;;  %v2408_v3 = vpack.c.bf16 %v1665_v58, %v1658_v47 }
 0x257   : > { %v1272_v45 = vpop.permute.xlu1 %1271  ;;  %v1570_v43 = vpop.permute.xlu0 %1569  ;;  %2409 = vmatpush3.bf16.msra.mxu1 %v2408_v3 }
 0x258   : > { %v1280_v63 = vsel %vm3995_vm9, %v3774_v8, %v1272_v45  ;;  %v1579_v49 = vsel %vm1573_vm13, %v1568_v9, %v1570_v43  ;;  %2410 = vmatprep.subr.bf16.mxu1 %v2688_v56  ;;  %v1684_v22 = vld [vmem:[#allocation2 + $0x2c0] sm:$0xff] }
 0x259   : > { %1294 = vst [vmem:[#allocation2 + $0x260] sm:$0xf] %v1280_v63  ;;  %1593 = vst [vmem:[#allocation2 + $0x300] sm:$0xf] %v1579_v49 }
 0x25b   : > { %v1372_v32 = vpop.permute.xlu1 %1371  ;;  %v1322_v61 = vpop.permute.xlu0 %1321 }
 0x25c   : > { %v1380_v62 = vsel %vm3996_vm10, %v1370_v25, %v1372_v32  ;;  %v1330_v20 = vsel %vm3997_vm3, %v3780_v7, %v1322_v61  ;;  %v1691_v48 = vld [vmem:[#allocation2 + $0x2f8] sm:$0xf]  ;;  %v1685_v4 = vld [vmem:[#allocation2 + $0x2c8] sm:$0xff]  ;;  %v2012_v25 = vshrl.u32 %v2011_v30, 7 }
 0x25d   : > { %1394 = vst [vmem:[#allocation2 + $0x298] sm:$0xf] %v1380_v62  ;;  %1344 = vst [vmem:[#allocation2 + $0x260] sm:$0xf0] %v1330_v20  ;;  %v2392_v18 = vpack.c.bf16 %v1691_v48, %v1684_v22 }
 0x25e   : > { %v2013_v17 = vsub.s32 0, %v2012_v25  ;;  %v2017_v42 = vsub.s32 1, %v2012_v25  ;;  %v2021_v19 = vsub.s32 2, %v2012_v25  ;;  %v2025_v12 = vsub.s32 3, %v2012_v25 }
 0x25f   : > { %v1472_v59 = vpop.permute.xlu1 %1471  ;;  %v1422_v11 = vpop.permute.xlu0 %1421  ;;  %v2029_v9 = vsub.s32 4, %v2012_v25  ;;  %v2037_v32 = vsub.s32 6, %v2012_v25 }
 0x260   : > { %v1480_v14 = vsel %vm1473_vm0, %v1470_v40, %v1472_v59  ;;  %v1430_v38 = vsel %vm3998_vm4, %v1420_v6, %v1422_v11  ;;  %v1692_v29 = vld [vmem:[#allocation2 + $0x300] sm:$0xf]  ;;  %v2014_v6 = vrot.slane %v2009_v33, %v2013_v17  ;;  %v2022_v51 = vrot.slane %v2009_v33, %v2021_v19 }
 0x261   : > { %1494 = vst [vmem:[#allocation2 + $0x2d0] sm:$0xf] %v1480_v14  ;;  %1444 = vst [vmem:[#allocation2 + $0x298] sm:$0xf0] %v1430_v38  ;;  %v2389_v16 = vpack.c.bf16 %v1692_v29, %v1685_v4  ;;  %v2026_v24 = vrot.slane %v2009_v33, %v2025_v12  ;;  %v2030_v57 = vrot.slane %v2009_v33, %v2029_v9 }
 0x262   : > { %v2038_v59 = vrot.slane %v2009_v33, %v2037_v32 }
 0x263   : > { %v1572_v8 = vpop.permute.xlu1 %1571  ;;  %v1522_v55 = vpop.permute.xlu0 %1521  ;;  %2391 = vmatprep.subr.msk.bf16.mxu0 %vm3544_vm11, %v2389_v16 }
 0x264   : > { %v1580_v35 = vsel %vm1573_vm13, %v1570_v43, %v1572_v8  ;;  %v1530_v36 = vsel %vm1523_vm15, %v1520_v39, %v1522_v55  ;;  %2394 = vmatpush1.bf16.msk.msra.mxu0 %vm3544_vm11, %v2392_v18  ;;  %v1672_v7 = vld [vmem:[#allocation2 + $0x260] sm:$0xff]  ;;  %v2033_v39 = vsub.s32 5, %v2012_v25 }
 0x265   : > { %1594 = vst [vmem:[#allocation2 + $0x308] sm:$0xf] %v1580_v35  ;;  %1544 = vst [vmem:[#allocation2 + $0x2d0] sm:$0xf0] %v1530_v36 }
 0x266   : > { %v2034_v37 = vrot.slane %v2009_v33, %v2033_v39 }
 0x267   : > { %2253 = vmatmul.mubr.msk.f32.vlgmr.msra.gmra.mrb[2].mxu0 %vm573_vm5, %v3578_v60 }
 0x268   : > { %v1679_v26 = vld [vmem:[#allocation2 + $0x298] sm:$0xff] }
 0x269   : > { %v2411_v23 = vpack.c.bf16 %v1679_v26, %v1672_v7 }
 0x26b   : > { %2412 = vmatpush3.bf16.msra.mxu1 %v2411_v23 }
 0x26c   : > { %2413 = vmatprep.subr.bf16.mxu1 %v2688_v56  ;;  %v1686_v27 = vld [vmem:[#allocation2 + $0x2d0] sm:$0xff]  ;;  %v1693_v46 = vld [vmem:[#allocation2 + $0x308] sm:$0xf]  ;;  %v2018_v56 = vrot.slane %v2009_v33, %v2017_v42 }
 0x26d   : > { %v2414_v10 = vpack.c.bf16 %v1693_v46, %v1686_v27 }
 0x26f   : > { %2416 = vmatpush3.bf16.msk.msra.mxu1 %vm3544_vm11, %v2414_v10 }
 0x272   : > { %2303 = vmatmul.mubr.msk.f32.vlgmr.msra.gmra.mrb[2].mxu1 %vm573_vm5, %v3578_v60 }
 0x2a5   : > { %v1785_v15 = vpop.f32.mrb[0].mxu0 }
 0x2a6   : > { %2002 = vst [vmem:[%s3833_s26] sm:$0xff] %v1785_v15  ;;  %v2046_v50 = vmul.f32 %v2014_v6, %v1785_v15  ;;  %v1787_v60 = vpop.f32.mrb[1].mxu0 }
 0x2a7   : > { %2003 = vst [vmem:[%s3833_s26 + $0x8] sm:$0xff] %v1787_v60  ;;  %v2047_v31 = vmul.f32 %v2018_v56, %v1787_v60 }
 0x2a8   : > { %v2063_v41 = vmul.f32 %v2046_v50, %v1785_v15 }
 0x2a9   : > { %v2053_v28 = vadd.f32 %v2047_v31, %v2046_v50  ;;  %v2064_v13 = vmul.f32 %v2047_v31, %v1787_v60 }
 0x2ab   : > { %v2070_v34 = vadd.f32 %v2064_v13, %v2063_v41 }
 0x2ba   : > { %v1856_v1 = vpop.f32.mrb[0].mxu1 }
 0x2bb   : > { %2004 = vst [vmem:[%s3833_s26 + $0x10] sm:$0xff] %v1856_v1  ;;  %v2048_v21 = vmul.f32 %v2022_v51, %v1856_v1  ;;  %v1858_v44 = vpop.f32.mrb[1].mxu1 }
 0x2bc   : > { %2005 = vst [vmem:[%s3833_s26 + $0x18] sm:$0xff] %v1858_v44  ;;  %v2049_v52 = vmul.f32 %v2026_v24, %v1858_v44 }
 0x2bd   : > { %v2054_v53 = vadd.f32 %v2053_v28, %v2048_v21  ;;  %v2065_v5 = vmul.f32 %v2048_v21, %v1856_v1 }
 0x2be   : > { %v2066_v54 = vmul.f32 %v2049_v52, %v1858_v44 }
 0x2bf   : > { %v2071_v40 = vadd.f32 %v2070_v34, %v2065_v5  ;;  %v2055_v2 = vadd.f32 %v2054_v53, %v2049_v52 }
 0x2c1   : > { %v2072_v0 = vadd.f32 %v2071_v40, %v2066_v54 }
 0x33a   : > { %v1927_v47 = vpop.f32.mrb[2].mxu0 }
 0x33b   : > { %2006 = vst [vmem:[%s3833_s26 + $0x20] sm:$0xff] %v1927_v47  ;;  %v2050_v58 = vmul.f32 %v2030_v57, %v1927_v47  ;;  %v1929_v3 = vpop.f32.mrb[3].mxu0 }
 0x33c   : > { %2007 = vst [vmem:[%s3833_s26 + $0x28] sm:$0xff] %v1929_v3  ;;  %v2051_v45 = vmul.f32 %v2034_v37, %v1929_v3 }
 0x33d   : > { %v2056_v43 = vadd.f32 %v2055_v2, %v2050_v58  ;;  %v2067_v63 = vmul.f32 %v2050_v58, %v1927_v47 }
 0x33e   : > { %v2068_v49 = vmul.f32 %v2051_v45, %v1929_v3 }
 0x33f   : > { %v2073_v61 = vadd.f32 %v2072_v0, %v2067_v63  ;;  %v2057_v62 = vadd.f32 %v2056_v43, %v2051_v45 }
 0x341   : > { %v2074_v20 = vadd.f32 %v2073_v61, %v2068_v49 }
 0x345   : > { %v1998_v11 = vpop.f32.mrb[2].mxu1 }
 0x346   : > { %2008 = vst [vmem:[%s3833_s26 + $0x30] sm:$0xff] %v1998_v11  ;;  %v2052_v48 = vmul.f32 %v2038_v59, %v1998_v11  ;;  %v2304_v14 = vpop.f32.mrb[3].mxu1 }
 0x348   : > { %v2069_v38 = vmul.f32 %v2052_v48, %v1998_v11  ;;  %v2058_v4 = vadd.f32 %v2057_v62, %v2052_v48 }
 0x34a   : > { %2059 = vadd.xlane.f32.xlu0 %v2058_v4  ;;  %v2075_v29 = vadd.f32 %v2074_v20, %v2069_v38 }
 0x34c   : > { %2076 = vadd.xlane.f32.xlu1 %v2075_v29 }
 0x34d   : > { %2599 = shalt.err (!%p2596_p10)
}
 0x34e   : > { %s2600_s15 = scalar_lea.hbm %s3847_s14, 896  ;;  %s2604_s16 = scalar_lea.hbm %s3896_s3, 1792 }
 0x34f   : > { %p2601_p1 = scmp.ne.s32.totalorder %s3847_s14, %s2600_s15  ;;  %p2605_p3 = scmp.lt.u32.totalorder %s3847_s14, %s3896_s3 }
 0x350   : > { %p2606_p0 = scmp.lt.u32.totalorder %s2604_s16, %s2600_s15  ;;  %p2608_p6 = scmp.lt.u32.totalorder %s2600_s15, %s3847_s14 }
 0x351   : > { %p2602_p2 = pnand %p2601_p1, %p2813_p8 }
 0x352   : > { %p2607_p4 = por %p2606_p0, %p2605_p3 }
 0x353   : > { %p2603_p7 = pneg %p2602_p2 }
 0x354   : > { %p2609_p9 = por %p2608_p6, %p2607_p4 }
 0x356   : > { %p2610_p12 = pnand %p2609_p9, %p2603_p7 }
 0x358   : > { %2613 = shalt.err (!%p2610_p12)
}
 0x359   : > { %2428 = dma.vmem_to_hbm [thread:$0]  (%p2813_p8), %s2103_s11, 896, %s3847_s14, %s2080_s10   ;;  %vm2061_vm5 = vcmask 7168  }
 0x35a   : > { %p267_p13 = scmp.lt.s32.totalorder %s2742_s22, 1 }
 0x35c   : > { %s4006_s22 = smov (!%p267_p13, %s2742_s22), 1 }
 0x35d   : > { %s2243_s24 = sshll.u32 %s4006_s22, 3 }
 0x35e   : > { %s270_s28 = scalar_lea.vmem %s3897_s4, %s2243_s24  ;;  %s274_s9 = scalar_lea.vmem %s3898_s5, %s2243_s24 }
 0x3d7   : > { %v2060_v16 = vpop.xlane.xlu0 %2059 }
 0x3d8   : > { %2062 = vst.msk [vmem:[%s270_s28] sm:$0xff] %vm2061_vm5, %v2060_v16 }
 0x3d9   : > { %v2077_v22 = vpop.xlane.xlu1 %2076 }
 0x3da   : > { %2078 = vst.msk [vmem:[%s274_s9] sm:$0xff] %vm2061_vm5, %v2077_v22 }
 0x3db PF: > { %s2120_s30 = sand.u32 1, %s2644_s18   ;;  %p3999_p8 = scmp.ne.s32.totalorder %s3937_s25, 0 }
 0x3dc   : > { %p4000_p11 = scmp.ge.s32.totalorder %s2656_s21, 2  ;;  %s2121_s22 = scalar_lea.sflag [#allocation5], %s2120_s30 }
 0x3de   : > { %p2439_p5 = pnand %p4000_p11, %p3999_p8 }
 0x3e0   : > { %2639 = dma.done.wait (!%p2439_p5), %s2121_s22, 896  }
 0x3e1   : > { %2641 = vsyncadd (!%p2439_p5), %s2121_s22, 4294966400  ;;  %p20_p10 = scmp.ge.s32.totalorder %s2769_s29, 4   ;;  %s4001_s18 = smov %s2648_s19 }
 0x3e2   : > { %s4002_s19 = smov %s2652_s20  ;;  %s4003_s20 = smov %s2805_s27 }
 0x3e3   : > { %s4004_s21 = smov %s2769_s29  ;;  %22 = sbr.rel (!%p20_p10) target bundleno = 6 (0x6), region = 105 }
 0x3ea   :  { %2140 = vsyncpa [#allocation4], 1 }
 0x3eb   :  { %2142 = vsyncpa [#allocation4 + $0x1], 1 }
 0x3ec   :  { %2143 = vsyncpa [#allocation7], 1 }
 0x3ed   :  { %2144 = vsyncpa [#allocation5], 1 }
 0x3ee   :  { %2146 = vsyncpa [#allocation5 + $0x1], 1 }

</bundles_post_ra>
